<compile_context>
chip_gen: v7x
topology: tpu7x:2x2x1
jax: 0.10.0
libtpu: 0.0.40
codegen_flags: <defaults>
</compile_context>

<pallas_src>
import jax
import jax.numpy as jnp
from jax import lax
from jax.experimental import pallas as pl
from jax.experimental.pallas import tpu as pltpu


# Left column-halo width of the padded VMEM scratch. Using 8 keeps the interior store
# sublane-aligned; only column (_LPAD - 1) is ever read (as the zero halo).
_LPAD = 8
# Output rows per fused depthwise+projection band.
_BAND = 8


def _round_up(x, m):
    return (x + m - 1) // m * m


# ------------------------------ fused kernel ---------------------------------


def _make_fused_kernel(*, s, Ho, Wo, C_in, C_exp, C_out_pad, expand, use_res):
    """Build the fused LinearBottleneck kernel for a static shape/config.

    Ref order: x, [w1, b1], wdw, bdw, w2, b2, out, scratch.
      x       : (1, s*s, Ho*Wo, C_in)   spatial-parity planes of the input
      w1      : (C_in, C_exp)           BN scale already folded in
      wdw     : (9, C_exp)              BN scale already folded in
      w2      : (C_exp, C_out_pad)      BN scale folded in, columns zero-padded to 128n
      b*      : (1, C)
      out     : (1, Ho*Wo, C_out_pad)   lane-dense padded output slab
      scratch : (s*s, Ho+2, _LPAD+Wo+1, C_exp) padded expanded activation (VMEM)
    """
    HWo = Ho * Wo
    Wp = _LPAD + Wo + 1

    # Static output-row bands for the fused depthwise + projection stages.
    bands = []
    r0 = 0
    while r0 < Ho:
        rows = min(_BAND, Ho - r0)
        bands.append((r0, rows))
        r0 += rows

    def kernel(*refs):
        it = iter(refs)
        x_ref = next(it)
        if expand:
            w1_ref = next(it)
            b1_ref = next(it)
        wdw_ref = next(it)
        bdw_ref = next(it)
        w2_ref = next(it)
        b2_ref = next(it)
        o_ref = next(it)
        e_ref = next(it)

        # ---- zero ONLY the halo cells the 3x3 taps read (border never written,
        #      interior fully overwritten by stage 1 every grid step). ----
        e_ref[:, 0:1, :, :] = jnp.zeros((s * s, 1, Wp, C_exp), jnp.float32)
        e_ref[:, Ho + 1:Ho + 2, :, :] = jnp.zeros((s * s, 1, Wp, C_exp), jnp.float32)
        e_ref[:, :, _LPAD - 1:_LPAD, :] = jnp.zeros((s * s, Ho + 2, 1, C_exp),
                                                    jnp.float32)
        e_ref[:, :, _LPAD + Wo:_LPAD + Wo + 1, :] = jnp.zeros(
            (s * s, Ho + 2, 1, C_exp), jnp.float32)

        # ---- hoisted weight / bias loads (ref loads are not CSE'd in loops) ----
        wdw = wdw_ref[...]        # (9, C_exp)
        bdw = bdw_ref[0]          # (C_exp,)
        w2 = w2_ref[...]          # (C_exp, C_out_pad)
        b2 = b2_ref[...]          # (1, C_out_pad)

        # ---- stage 1: 1x1 expansion conv (+folded BN) + ReLU6 — ONE merged MXU op ----
        x_all = x_ref[0].reshape(s * s * HWo, C_in)
        if expand:
            w1 = w1_ref[...]
            b1 = b1_ref[...]
            e_all = jnp.dot(x_all, w1, preferred_element_type=jnp.float32)
            e_all = jnp.clip(e_all + b1, 0.0, 6.0)
        else:
            e_all = x_all.astype(jnp.float32)
        e_all = e_all.reshape(s * s, Ho, Wo, C_exp)
        for pidx in range(s * s):
            e_ref[pidx, pl.ds(1, Ho), pl.ds(_LPAD, Wo), :] = e_all[pidx]

        # ---- stages 2+3 fused, banded over output rows ----
        # stage 2: 3x3 depthwise conv (stride s via parity planes) + folded BN + ReLU6
        # stage 3: 1x1 projection conv (+folded BN) + bias (+residual), lane-dense store
        for (b0, rows) in bands:
            acc = jnp.zeros((rows, Wo, C_exp), jnp.float32)
            for ki in range(3):
                pi = (ki - 1) % s
                ai = (ki - 1 - pi) // s                     # in {-1, 0, 1}
                for kj in range(3):
                    qj = (kj - 1) % s
                    bj = (kj - 1 - qj) // s
                    # Slice the tap directly from the ref (no full-plane live values).
                    tap = e_ref[pi * s + qj,
                                pl.ds(1 + ai + b0, rows),
                                pl.ds(_LPAD + bj, Wo), :]
                    acc = acc + tap * wdw[ki * 3 + kj, :]
            d = jnp.clip(acc + bdw, 0.0, 6.0)

            y = jnp.dot(d.reshape(rows * Wo, C_exp), w2,
                        preferred_element_type=jnp.float32)
            y = y + b2
            if use_res:
                res = x_ref[0, 0, pl.ds(b0 * Wo, rows * Wo), :].astype(jnp.float32)
                if C_out_pad > C_in:
                    res = jnp.concatenate(
                        [res, jnp.zeros((rows * Wo, C_out_pad - C_in), jnp.float32)],
                        axis=1)
                y = y + res
            o_ref[0, pl.ds(b0 * Wo, rows * Wo), :] = y.astype(o_ref.dtype)

    return kernel


# -------------------------------- wrapper ------------------------------------


def linear_bottleneck_fused(x_nhwc, *, stride, expand, use_res,
                            w1, b1, wdw, bdw, w2, b2, c_exp, c_out):
    """Fused LinearBottleneck forward on an NHWC input. BN scales pre-folded into w*."""
    N, H, W, C_in = x_nhwc.shape
    s = stride
    assert H % s == 0 and W % s == 0, "spatial dims must be divisible by the stride"
    Ho, Wo = H // s, W // s
    HWo = Ho * Wo

    # Lane-dense projection/output: zero-pad projection columns to a multiple of 128.
    c_out_pad = _round_up(c_out, 128)
    w2p = jnp.zeros((c_exp, c_out_pad), w2.dtype).at[:, :c_out].set(w2)
    b2p = jnp.zeros((1, c_out_pad), jnp.float32).at[0, :c_out].set(b2)

    # Space-to-depth the *small* pre-expansion input into s*s spatial-parity planes
    # (a free metadata reshape for s == 1).
    xp = x_nhwc.reshape(N, Ho, s, Wo, s, C_in)
    xp = xp.transpose(0, 2, 4, 1, 3, 5).reshape(N, s * s, HWo, C_in)

    kern = _make_fused_kernel(s=s, Ho=Ho, Wo=Wo, C_in=C_in, C_exp=c_exp,
                              C_out_pad=c_out_pad, expand=expand, use_res=use_res)

    def full(shape):
        nd = len(shape)
        return pl.BlockSpec(shape, lambda n, _nd=nd: (0,) * _nd)

    in_specs = [pl.BlockSpec((1, s * s, HWo, C_in), lambda n: (n, 0, 0, 0))]
    args = [xp]
    if expand:
        in_specs += [full(w1.shape), full((1, c_exp))]
        args += [w1, b1.reshape(1, c_exp)]
    in_specs += [full((9, c_exp)), full((1, c_exp)),
                 full((c_exp, c_out_pad)), full((1, c_out_pad))]
    args += [wdw, bdw.reshape(1, c_exp), w2p, b2p]

    # TODO(synk): for very large H*W*C_exp on v7x (64 MiB VMEM), add a second grid axis
    # over output-row bands with a 1-row halo instead of the full-image scratch.
    out2d = pl.pallas_call(
        kern,
        out_shape=jax.ShapeDtypeStruct((N, HWo, c_out_pad), x_nhwc.dtype),
        grid_spec=pltpu.PrefetchScalarGridSpec(
            num_scalar_prefetch=0,
            grid=(N,),
            in_specs=in_specs,
            out_specs=pl.BlockSpec((1, HWo, c_out_pad), lambda n: (n, 0, 0)),
            scratch_shapes=[
                pltpu.VMEM((s * s, Ho + 2, _LPAD + Wo + 1, c_exp), jnp.float32)],
        ),
        compiler_params=pltpu.CompilerParams(
            dimension_semantics=("parallel",)),
    )(*args)
    return out2d[:, :, :c_out].reshape(N, Ho, Wo, c_out)


# ----------------------------- LinearBottleneck -------------------------------


def _fused_bn(gamma, beta, mean, var, eps=1e-5):
    scale = gamma / jnp.sqrt(var + eps)
    bias = beta - mean * scale
    return scale.astype(jnp.float32), bias.astype(jnp.float32)


class LinearBottleneckPallas:
    """Mirror of the PyTorch LinearBottleneck forward (eval-mode BatchNorm)."""

    def __init__(self, key, input_channels, output_channels, expansion,
                 stride=1, expansion_channels=None):
        self.stride = stride
        self.input_channels = input_channels
        self.output_channels = output_channels
        self.expansion = expansion
        self.expansion_channels = (input_channels * expansion
                                   if expansion_channels is None
                                   else expansion_channels)
        C_in, C_exp, C_out = input_channels, self.expansion_channels, output_channels

        ks = jax.random.split(key, 12)

        def bn_params(k, c):
            k1, k2, k3, k4 = jax.random.split(k, 4)
            gamma = jax.random.uniform(k1, (c,), jnp.float32, 0.5, 1.5)
            beta = 0.1 * jax.random.normal(k2, (c,), jnp.float32)
            mean = 0.1 * jax.random.normal(k3, (c,), jnp.float32)
            var = jax.random.uniform(k4, (c,), jnp.float32, 0.5, 1.5)
            return _fused_bn(gamma, beta, mean, var)

        if self.expansion != 1:
            # torch conv weight (C_exp, C_in, 1, 1) -> stored (C_in, C_exp) for matmul
            self.w1 = 0.1 * jax.random.normal(ks[0], (C_in, C_exp), jnp.float32)
            self.s1, self.b1 = bn_params(ks[1], C_exp)
        # torch dw weight (C_exp, 1, 3, 3) -> stored (9, C_exp)
        self.wdw = (0.1 * jax.random.normal(ks[2], (C_exp, 1, 3, 3), jnp.float32)
                    ).reshape(C_exp, 9).T
        self.sdw, self.bdw = bn_params(ks[3], C_exp)
        # torch pw weight (C_out, C_exp, 1, 1) -> stored (C_exp, C_out)
        self.w2 = 0.1 * jax.random.normal(ks[4], (C_exp, C_out), jnp.float32)
        self.s2, self.b2 = bn_params(ks[5], C_out)

    def apply_nhwc(self, x_nhwc):
        """NHWC-in / NHWC-out forward (lets chained blocks skip layout transposes)."""
        expand = self.expansion != 1
        use_res = (self.stride == 1 and
                   self.input_channels == self.output_channels)
        if not expand:
            assert self.expansion_channels == self.input_channels
        # Fold eval-mode BN scales into the conv weights (host-side, done once).
        w1f = self.w1 * self.s1[None, :] if expand else None
        b1f = self.b1 if expand else None
        wdwf = self.wdw * self.sdw[None, :]
        w2f = self.w2 * self.s2[None, :]
        return linear_bottleneck_fused(
            x_nhwc, stride=self.stride, expand=expand, use_res=use_res,
            w1=w1f, b1=b1f, wdw=wdwf, bdw=self.bdw, w2=w2f, b2=self.b2,
            c_exp=self.expansion_channels, c_out=self.output_channels)

    def __call__(self, x_nchw):
        N, C, H, W = x_nchw.shape
        assert C == self.input_channels
        x = jnp.transpose(x_nchw, (0, 2, 3, 1))       # NCHW -> NHWC
        y = self.apply_nhwc(x)
        return jnp.transpose(y, (0, 3, 1, 2))         # NHWC -> NCHW


# ------------------------------ pure-JAX reference ----------------------------


def reference_forward(block: LinearBottleneckPallas, x_nchw):
    x = jnp.transpose(x_nchw, (0, 2, 3, 1))
    inputs = x
    dn = ("NHWC", "HWIO", "NHWC")
    y = x
    if block.expansion != 1:
        y = lax.conv_general_dilated(y, block.w1.reshape(1, 1, *block.w1.shape),
                                     (1, 1), "VALID", dimension_numbers=dn)
        y = jnp.clip(y * block.s1 + block.b1, 0.0, 6.0)
    C_exp = block.expansion_channels
    wdw = block.wdw.reshape(3, 3, 1, C_exp)
    y = lax.conv_general_dilated(y, wdw, (block.stride, block.stride),
                                 ((1, 1), (1, 1)), dimension_numbers=dn,
                                 feature_group_count=C_exp)
    y = jnp.clip(y * block.sdw + block.bdw, 0.0, 6.0)
    y = lax.conv_general_dilated(y, block.w2.reshape(1, 1, *block.w2.shape),
                                 (1, 1), "VALID", dimension_numbers=dn)
    y = y * block.s2 + block.b2
    if block.stride == 1 and block.input_channels == block.output_channels:
        y = y + inputs
    return jnp.transpose(y, (0, 3, 1, 2))


# ---------------------------------- main --------------------------------------


if __name__ == "__main__":
    key = jax.random.PRNGKey(0)
    k1, k2, k3, kx = jax.random.split(key, 4)
    N, H, W = 2, 16, 16

    configs = [
        # (param_key, C_in, C_out, expansion, stride)
        (k1, 8, 8, 6, 1),    # expanded block with residual
        (k2, 8, 16, 6, 2),   # expanded, stride-2 (strided output only), no residual
        (k3, 8, 8, 1, 1),    # expansion == 1 (no expand conv) with residual
    ]

    for kp, c_in, c_out, expn, st in configs:
        block = LinearBottleneckPallas(kp, input_channels=c_in,
                                       output_channels=c_out,
                                       expansion=expn, stride=st)
        kxi = jax.random.fold_in(kx, 100 * st + expn)
        x = jax.random.normal(kxi, (N, c_in, H, W), jnp.float32)

        out = jax.block_until_ready(block(x))
        ref = jax.block_until_ready(reference_forward(block, x))

        assert out.shape == ref.shape, (out.shape, ref.shape)
        assert jnp.allclose(out, ref, atol=1e-4, rtol=1e-4), (
            f"mismatch vs reference (expansion={expn}, stride={st})")

    print("KERNEL_OK")
</pallas_src>

<mosaic_0001>
module attributes {stable_mosaic.version = 11 : i64} {
  func.func @kernel(%arg0: i32, %arg1: memref<1x1x256x8xf32, #tpu.memory_space<vmem>>, %arg2: memref<8x48xf32, #tpu.memory_space<vmem>>, %arg3: memref<1x48xf32, #tpu.memory_space<vmem>>, %arg4: memref<9x48xf32, #tpu.memory_space<vmem>>, %arg5: memref<1x48xf32, #tpu.memory_space<vmem>>, %arg6: memref<48x128xf32, #tpu.memory_space<vmem>>, %arg7: memref<1x128xf32, #tpu.memory_space<vmem>>, %arg8: memref<1x256x128xf32, #tpu.memory_space<vmem>>, %arg9: memref<1x18x25x48xf32, #tpu.memory_space<vmem>>) attributes {dimension_semantics = [#tpu.dimension_semantics<parallel>], iteration_bounds = array<i64: 2>, scalar_prefetch = 0 : i64, scratch_operands = 1 : i64, tpu.core_type = #tpu.core_type<tc>, window_params = [{transform_indices = @transform_0, window_bounds = array<i64: 1, 1, 256, 8>}, {pipeline_mode = #tpu.pipeline_mode<synchronous>, transform_indices = @transform_1, window_bounds = array<i64: 8, 48>}, {pipeline_mode = #tpu.pipeline_mode<synchronous>, transform_indices = @transform_2, window_bounds = array<i64: 1, 48>}, {pipeline_mode = #tpu.pipeline_mode<synchronous>, transform_indices = @transform_3, window_bounds = array<i64: 9, 48>}, {pipeline_mode = #tpu.pipeline_mode<synchronous>, transform_indices = @transform_4, window_bounds = array<i64: 1, 48>}, {pipeline_mode = #tpu.pipeline_mode<synchronous>, transform_indices = @transform_5, window_bounds = array<i64: 48, 128>}, {pipeline_mode = #tpu.pipeline_mode<synchronous>, transform_indices = @transform_6, window_bounds = array<i64: 1, 128>}, {transform_indices = @transform_7, window_bounds = array<i64: 1, 256, 128>}]} {
    %cst = arith.constant 0.000000e+00 : f32
    %0 = vector.broadcast %cst : f32 to vector<1x1x25x48xf32>
    %c0 = arith.constant 0 : index
    %c0_0 = arith.constant 0 : index
    %c0_1 = arith.constant 0 : index
    %c0_2 = arith.constant 0 : index
    %1 = vector.load %arg9[%c0, %c0_0, %c0_1, %c0_2] : memref<1x18x25x48xf32, #tpu.memory_space<vmem>>, vector<1x1x25x48xf32>
    tpu.vector_store %arg9[%c0, %c0_0, %c0_1, %c0_2], %0 {strides = array<i32>} : memref<1x18x25x48xf32, #tpu.memory_space<vmem>>, vector<1x1x25x48xf32>,
    %cst_3 = arith.constant 0.000000e+00 : f32
    %2 = vector.broadcast %cst_3 : f32 to vector<1x1x25x48xf32>
    %c0_4 = arith.constant 0 : index
    %c17 = arith.constant 17 : index
    %c0_5 = arith.constant 0 : index
    %c0_6 = arith.constant 0 : index
    %3 = vector.load %arg9[%c0_4, %c17, %c0_5, %c0_6] : memref<1x18x25x48xf32, #tpu.memory_space<vmem>>, vector<1x1x25x48xf32>
    tpu.vector_store %arg9[%c0_4, %c17, %c0_5, %c0_6], %2 {strides = array<i32>} : memref<1x18x25x48xf32, #tpu.memory_space<vmem>>, vector<1x1x25x48xf32>,
    %cst_7 = arith.constant 0.000000e+00 : f32
    %4 = vector.broadcast %cst_7 : f32 to vector<1x18x1x48xf32>
    %c0_8 = arith.constant 0 : index
    %c0_9 = arith.constant 0 : index
    %c7 = arith.constant 7 : index
    %c0_10 = arith.constant 0 : index
    %5 = vector.load %arg9[%c0_8, %c0_9, %c7, %c0_10] : memref<1x18x25x48xf32, #tpu.memory_space<vmem>>, vector<1x18x1x48xf32>
    tpu.vector_store %arg9[%c0_8, %c0_9, %c7, %c0_10], %4 {strides = array<i32>} : memref<1x18x25x48xf32, #tpu.memory_space<vmem>>, vector<1x18x1x48xf32>,
    %cst_11 = arith.constant 0.000000e+00 : f32
    %6 = vector.broadcast %cst_11 : f32 to vector<1x18x1x48xf32>
    %c0_12 = arith.constant 0 : index
    %c0_13 = arith.constant 0 : index
    %c24 = arith.constant 24 : index
    %c0_14 = arith.constant 0 : index
    %7 = vector.load %arg9[%c0_12, %c0_13, %c24, %c0_14] : memref<1x18x25x48xf32, #tpu.memory_space<vmem>>, vector<1x18x1x48xf32>
    tpu.vector_store %arg9[%c0_12, %c0_13, %c24, %c0_14], %6 {strides = array<i32>} : memref<1x18x25x48xf32, #tpu.memory_space<vmem>>, vector<1x18x1x48xf32>,
    %c0_15 = arith.constant 0 : index
    %c0_16 = arith.constant 0 : index
    %8 = vector.load %arg4[%c0_15, %c0_16] : memref<9x48xf32, #tpu.memory_space<vmem>>, vector<9x48xf32>
    %c0_17 = arith.constant 0 : index
    %c0_18 = arith.constant 0 : index
    %9 = vector.load %arg5[%c0_17, %c0_18] : memref<1x48xf32, #tpu.memory_space<vmem>>, vector<1x48xf32>
    %10 = vector.shape_cast %9 : vector<1x48xf32> to vector<48xf32>
    %c0_19 = arith.constant 0 : index
    %c0_20 = arith.constant 0 : index
    %11 = vector.load %arg6[%c0_19, %c0_20] : memref<48x128xf32, #tpu.memory_space<vmem>>, vector<48x128xf32>
    %c0_21 = arith.constant 0 : index
    %c0_22 = arith.constant 0 : index
    %12 = vector.load %arg7[%c0_21, %c0_22] : memref<1x128xf32, #tpu.memory_space<vmem>>, vector<1x128xf32>
    %c0_23 = arith.constant 0 : index
    %c0_24 = arith.constant 0 : index
    %c0_25 = arith.constant 0 : index
    %c0_26 = arith.constant 0 : index
    %13 = vector.load %arg1[%c0_23, %c0_24, %c0_25, %c0_26] : memref<1x1x256x8xf32, #tpu.memory_space<vmem>>, vector<1x1x256x8xf32>
    %14 = vector.shape_cast %13 : vector<1x1x256x8xf32> to vector<1x256x8xf32>
    %15 = vector.shape_cast %14 : vector<1x256x8xf32> to vector<256x8xf32>
    %c0_27 = arith.constant 0 : index
    %c0_28 = arith.constant 0 : index
    %16 = vector.load %arg2[%c0_27, %c0_28] : memref<8x48xf32, #tpu.memory_space<vmem>>, vector<8x48xf32>
    %c0_29 = arith.constant 0 : index
    %c0_30 = arith.constant 0 : index
    %17 = vector.load %arg3[%c0_29, %c0_30] : memref<1x48xf32, #tpu.memory_space<vmem>>, vector<1x48xf32>
    %cst_31 = arith.constant dense<0.000000e+00> : vector<256x48xf32>
    %18 = tpu.matmul %15, %16, %cst_31 {dimension_numbers = #tpu.dot_dimension_numbers<[1], [0], [0], [1], [0, 0, 1, 1], [], []>} : vector<256x8xf32>, vector<8x48xf32>, vector<256x48xf32> -> vector<256x48xf32>
    %19 = vector.broadcast %17 : vector<1x48xf32> to vector<256x48xf32>
    %20 = arith.addf %18, %19 : vector<256x48xf32>
    %cst_32 = arith.constant 0.000000e+00 : f32
    %cst_33 = arith.constant 6.000000e+00 : f32
    %21 = vector.broadcast %cst_32 : f32 to vector<256x48xf32>
    %22 = arith.maximumf %21, %20 : vector<256x48xf32>
    %23 = vector.broadcast %cst_33 : f32 to vector<256x48xf32>
    %24 = arith.minimumf %23, %22 : vector<256x48xf32>
    %25 = vector.shape_cast %24 : vector<256x48xf32> to vector<1x16x16x48xf32>
    %26 = vector.shape_cast %25 : vector<1x16x16x48xf32> to vector<16x16x48xf32>
    %c0_34 = arith.constant 0 : index
    %c1 = arith.constant 1 : index
    %c8 = arith.constant 8 : index
    %c0_35 = arith.constant 0 : index
    %27 = vector.load %arg9[%c0_34, %c1, %c8, %c0_35] : memref<1x18x25x48xf32, #tpu.memory_space<vmem>>, vector<1x16x16x48xf32>
    %28 = vector.shape_cast %27 : vector<1x16x16x48xf32> to vector<16x16x48xf32>
    %29 = vector.shape_cast %26 : vector<16x16x48xf32> to vector<1x16x16x48xf32>
    tpu.vector_store %arg9[%c0_34, %c1, %c8, %c0_35], %29 {strides = array<i32>} : memref<1x18x25x48xf32, #tpu.memory_space<vmem>>, vector<1x16x16x48xf32>,
    %cst_36 = arith.constant 0.000000e+00 : f32
    %30 = vector.broadcast %cst_36 : f32 to vector<8x16x48xf32>
    %c0_37 = arith.constant 0 : index
    %c0_38 = arith.constant 0 : index
    %c7_39 = arith.constant 7 : index
    %c0_40 = arith.constant 0 : index
    %31 = vector.load %arg9[%c0_37, %c0_38, %c7_39, %c0_40] : memref<1x18x25x48xf32, #tpu.memory_space<vmem>>, vector<1x8x16x48xf32>
    %32 = vector.shape_cast %31 : vector<1x8x16x48xf32> to vector<8x16x48xf32>
    %33 = vector.extract_strided_slice %8 {offsets = [0, 0], sizes = [1, 48], strides = [1, 1]} : vector<9x48xf32> to vector<1x48xf32>
    %34 = vector.shape_cast %33 : vector<1x48xf32> to vector<48xf32>
    %35 = vector.shape_cast %34 : vector<48xf32> to vector<1x1x48xf32>
    %36 = vector.broadcast %35 : vector<1x1x48xf32> to vector<8x16x48xf32>
    %37 = arith.mulf %32, %36 : vector<8x16x48xf32>
    %38 = arith.addf %30, %37 : vector<8x16x48xf32>
    %c0_41 = arith.constant 0 : index
    %c0_42 = arith.constant 0 : index
    %c8_43 = arith.constant 8 : index
    %c0_44 = arith.constant 0 : index
    %39 = vector.load %arg9[%c0_41, %c0_42, %c8_43, %c0_44] : memref<1x18x25x48xf32, #tpu.memory_space<vmem>>, vector<1x8x16x48xf32>
    %40 = vector.shape_cast %39 : vector<1x8x16x48xf32> to vector<8x16x48xf32>
    %41 = vector.extract_strided_slice %8 {offsets = [1, 0], sizes = [1, 48], strides = [1, 1]} : vector<9x48xf32> to vector<1x48xf32>
    %42 = vector.shape_cast %41 : vector<1x48xf32> to vector<48xf32>
    %43 = vector.shape_cast %42 : vector<48xf32> to vector<1x1x48xf32>
    %44 = vector.broadcast %43 : vector<1x1x48xf32> to vector<8x16x48xf32>
    %45 = arith.mulf %40, %44 : vector<8x16x48xf32>
    %46 = arith.addf %38, %45 : vector<8x16x48xf32>
    %c0_45 = arith.constant 0 : index
    %c0_46 = arith.constant 0 : index
    %c9 = arith.constant 9 : index
    %c0_47 = arith.constant 0 : index
    %47 = vector.load %arg9[%c0_45, %c0_46, %c9, %c0_47] : memref<1x18x25x48xf32, #tpu.memory_space<vmem>>, vector<1x8x16x48xf32>
    %48 = vector.shape_cast %47 : vector<1x8x16x48xf32> to vector<8x16x48xf32>
    %49 = vector.extract_strided_slice %8 {offsets = [2, 0], sizes = [1, 48], strides = [1, 1]} : vector<9x48xf32> to vector<1x48xf32>
    %50 = vector.shape_cast %49 : vector<1x48xf32> to vector<48xf32>
    %51 = vector.shape_cast %50 : vector<48xf32> to vector<1x1x48xf32>
    %52 = vector.broadcast %51 : vector<1x1x48xf32> to vector<8x16x48xf32>
    %53 = arith.mulf %48, %52 : vector<8x16x48xf32>
    %54 = arith.addf %46, %53 : vector<8x16x48xf32>
    %c0_48 = arith.constant 0 : index
    %c1_49 = arith.constant 1 : index
    %c7_50 = arith.constant 7 : index
    %c0_51 = arith.constant 0 : index
    %55 = vector.load %arg9[%c0_48, %c1_49, %c7_50, %c0_51] : memref<1x18x25x48xf32, #tpu.memory_space<vmem>>, vector<1x8x16x48xf32>
    %56 = vector.shape_cast %55 : vector<1x8x16x48xf32> to vector<8x16x48xf32>
    %57 = vector.extract_strided_slice %8 {offsets = [3, 0], sizes = [1, 48], strides = [1, 1]} : vector<9x48xf32> to vector<1x48xf32>
    %58 = vector.shape_cast %57 : vector<1x48xf32> to vector<48xf32>
    %59 = vector.shape_cast %58 : vector<48xf32> to vector<1x1x48xf32>
    %60 = vector.broadcast %59 : vector<1x1x48xf32> to vector<8x16x48xf32>
    %61 = arith.mulf %56, %60 : vector<8x16x48xf32>
    %62 = arith.addf %54, %61 : vector<8x16x48xf32>
    %c0_52 = arith.constant 0 : index
    %c1_53 = arith.constant 1 : index
    %c8_54 = arith.constant 8 : index
    %c0_55 = arith.constant 0 : index
    %63 = vector.load %arg9[%c0_52, %c1_53, %c8_54, %c0_55] : memref<1x18x25x48xf32, #tpu.memory_space<vmem>>, vector<1x8x16x48xf32>
    %64 = vector.shape_cast %63 : vector<1x8x16x48xf32> to vector<8x16x48xf32>
    %65 = vector.extract_strided_slice %8 {offsets = [4, 0], sizes = [1, 48], strides = [1, 1]} : vector<9x48xf32> to vector<1x48xf32>
    %66 = vector.shape_cast %65 : vector<1x48xf32> to vector<48xf32>
    %67 = vector.shape_cast %66 : vector<48xf32> to vector<1x1x48xf32>
    %68 = vector.broadcast %67 : vector<1x1x48xf32> to vector<8x16x48xf32>
    %69 = arith.mulf %64, %68 : vector<8x16x48xf32>
    %70 = arith.addf %62, %69 : vector<8x16x48xf32>
    %c0_56 = arith.constant 0 : index
    %c1_57 = arith.constant 1 : index
    %c9_58 = arith.constant 9 : index
    %c0_59 = arith.constant 0 : index
    %71 = vector.load %arg9[%c0_56, %c1_57, %c9_58, %c0_59] : memref<1x18x25x48xf32, #tpu.memory_space<vmem>>, vector<1x8x16x48xf32>
    %72 = vector.shape_cast %71 : vector<1x8x16x48xf32> to vector<8x16x48xf32>
    %73 = vector.extract_strided_slice %8 {offsets = [5, 0], sizes = [1, 48], strides = [1, 1]} : vector<9x48xf32> to vector<1x48xf32>
    %74 = vector.shape_cast %73 : vector<1x48xf32> to vector<48xf32>
    %75 = vector.shape_cast %74 : vector<48xf32> to vector<1x1x48xf32>
    %76 = vector.broadcast %75 : vector<1x1x48xf32> to vector<8x16x48xf32>
    %77 = arith.mulf %72, %76 : vector<8x16x48xf32>
    %78 = arith.addf %70, %77 : vector<8x16x48xf32>
    %c0_60 = arith.constant 0 : index
    %c2 = arith.constant 2 : index
    %c7_61 = arith.constant 7 : index
    %c0_62 = arith.constant 0 : index
    %79 = vector.load %arg9[%c0_60, %c2, %c7_61, %c0_62] : memref<1x18x25x48xf32, #tpu.memory_space<vmem>>, vector<1x8x16x48xf32>
    %80 = vector.shape_cast %79 : vector<1x8x16x48xf32> to vector<8x16x48xf32>
    %81 = vector.extract_strided_slice %8 {offsets = [6, 0], sizes = [1, 48], strides = [1, 1]} : vector<9x48xf32> to vector<1x48xf32>
    %82 = vector.shape_cast %81 : vector<1x48xf32> to vector<48xf32>
    %83 = vector.shape_cast %82 : vector<48xf32> to vector<1x1x48xf32>
    %84 = vector.broadcast %83 : vector<1x1x48xf32> to vector<8x16x48xf32>
    %85 = arith.mulf %80, %84 : vector<8x16x48xf32>
    %86 = arith.addf %78, %85 : vector<8x16x48xf32>
    %c0_63 = arith.constant 0 : index
    %c2_64 = arith.constant 2 : index
    %c8_65 = arith.constant 8 : index
    %c0_66 = arith.constant 0 : index
    %87 = vector.load %arg9[%c0_63, %c2_64, %c8_65, %c0_66] : memref<1x18x25x48xf32, #tpu.memory_space<vmem>>, vector<1x8x16x48xf32>
    %88 = vector.shape_cast %87 : vector<1x8x16x48xf32> to vector<8x16x48xf32>
    %89 = vector.extract_strided_slice %8 {offsets = [7, 0], sizes = [1, 48], strides = [1, 1]} : vector<9x48xf32> to vector<1x48xf32>
    %90 = vector.shape_cast %89 : vector<1x48xf32> to vector<48xf32>
    %91 = vector.shape_cast %90 : vector<48xf32> to vector<1x1x48xf32>
    %92 = vector.broadcast %91 : vector<1x1x48xf32> to vector<8x16x48xf32>
    %93 = arith.mulf %88, %92 : vector<8x16x48xf32>
    %94 = arith.addf %86, %93 : vector<8x16x48xf32>
    %c0_67 = arith.constant 0 : index
    %c2_68 = arith.constant 2 : index
    %c9_69 = arith.constant 9 : index
    %c0_70 = arith.constant 0 : index
    %95 = vector.load %arg9[%c0_67, %c2_68, %c9_69, %c0_70] : memref<1x18x25x48xf32, #tpu.memory_space<vmem>>, vector<1x8x16x48xf32>
    %96 = vector.shape_cast %95 : vector<1x8x16x48xf32> to vector<8x16x48xf32>
    %97 = vector.extract_strided_slice %8 {offsets = [8, 0], sizes = [1, 48], strides = [1, 1]} : vector<9x48xf32> to vector<1x48xf32>
    %98 = vector.shape_cast %97 : vector<1x48xf32> to vector<48xf32>
    %99 = vector.shape_cast %98 : vector<48xf32> to vector<1x1x48xf32>
    %100 = vector.broadcast %99 : vector<1x1x48xf32> to vector<8x16x48xf32>
    %101 = arith.mulf %96, %100 : vector<8x16x48xf32>
    %102 = arith.addf %94, %101 : vector<8x16x48xf32>
    %103 = vector.shape_cast %10 : vector<48xf32> to vector<1x1x48xf32>
    %104 = vector.broadcast %103 : vector<1x1x48xf32> to vector<8x16x48xf32>
    %105 = arith.addf %102, %104 : vector<8x16x48xf32>
    %cst_71 = arith.constant 0.000000e+00 : f32
    %cst_72 = arith.constant 6.000000e+00 : f32
    %106 = vector.broadcast %cst_71 : f32 to vector<8x16x48xf32>
    %107 = arith.maximumf %106, %105 : vector<8x16x48xf32>
    %108 = vector.broadcast %cst_72 : f32 to vector<8x16x48xf32>
    %109 = arith.minimumf %108, %107 : vector<8x16x48xf32>
    %110 = vector.shape_cast %109 : vector<8x16x48xf32> to vector<128x48xf32>
    %cst_73 = arith.constant dense<0.000000e+00> : vector<128x128xf32>
    %111 = tpu.matmul %110, %11, %cst_73 {dimension_numbers = #tpu.dot_dimension_numbers<[1], [0], [0], [1], [0, 0, 1, 1], [], []>} : vector<128x48xf32>, vector<48x128xf32>, vector<128x128xf32> -> vector<128x128xf32>
    %112 = vector.broadcast %12 : vector<1x128xf32> to vector<128x128xf32>
    %113 = arith.addf %111, %112 : vector<128x128xf32>
    %c0_74 = arith.constant 0 : index
    %c0_75 = arith.constant 0 : index
    %c0_76 = arith.constant 0 : index
    %c0_77 = arith.constant 0 : index
    %114 = vector.load %arg1[%c0_74, %c0_75, %c0_76, %c0_77] : memref<1x1x256x8xf32, #tpu.memory_space<vmem>>, vector<1x1x128x8xf32>
    %115 = vector.shape_cast %114 : vector<1x1x128x8xf32> to vector<128x8xf32>
    %cst_78 = arith.constant 0.000000e+00 : f32
    %116 = vector.broadcast %cst_78 : f32 to vector<128x120xf32>
    %117 = tpu.concatenate %115, %116 in 1 : vector<128x8xf32>, vector<128x120xf32> -> vector<128x128xf32>
    %118 = arith.addf %113, %117 : vector<128x128xf32>
    %c0_79 = arith.constant 0 : index
    %c0_80 = arith.constant 0 : index
    %c0_81 = arith.constant 0 : index
    %119 = vector.load %arg8[%c0_79, %c0_80, %c0_81] : memref<1x256x128xf32, #tpu.memory_space<vmem>>, vector<1x128x128xf32>
    %120 = vector.shape_cast %119 : vector<1x128x128xf32> to vector<128x128xf32>
    %121 = vector.shape_cast %118 : vector<128x128xf32> to vector<1x128x128xf32>
    tpu.vector_store %arg8[%c0_79, %c0_80, %c0_81], %121 {strides = array<i32>} : memref<1x256x128xf32, #tpu.memory_space<vmem>>, vector<1x128x128xf32>,
    %cst_82 = arith.constant 0.000000e+00 : f32
    %122 = vector.broadcast %cst_82 : f32 to vector<8x16x48xf32>
    %c0_83 = arith.constant 0 : index
    %c8_84 = arith.constant 8 : index
    %c7_85 = arith.constant 7 : index
    %c0_86 = arith.constant 0 : index
    %123 = vector.load %arg9[%c0_83, %c8_84, %c7_85, %c0_86] : memref<1x18x25x48xf32, #tpu.memory_space<vmem>>, vector<1x8x16x48xf32>
    %124 = vector.shape_cast %123 : vector<1x8x16x48xf32> to vector<8x16x48xf32>
    %125 = vector.extract_strided_slice %8 {offsets = [0, 0], sizes = [1, 48], strides = [1, 1]} : vector<9x48xf32> to vector<1x48xf32>
    %126 = vector.shape_cast %125 : vector<1x48xf32> to vector<48xf32>
    %127 = vector.shape_cast %126 : vector<48xf32> to vector<1x1x48xf32>
    %128 = vector.broadcast %127 : vector<1x1x48xf32> to vector<8x16x48xf32>
    %129 = arith.mulf %124, %128 : vector<8x16x48xf32>
    %130 = arith.addf %122, %129 : vector<8x16x48xf32>
    %c0_87 = arith.constant 0 : index
    %c8_88 = arith.constant 8 : index
    %c8_89 = arith.constant 8 : index
    %c0_90 = arith.constant 0 : index
    %131 = vector.load %arg9[%c0_87, %c8_88, %c8_89, %c0_90] : memref<1x18x25x48xf32, #tpu.memory_space<vmem>>, vector<1x8x16x48xf32>
    %132 = vector.shape_cast %131 : vector<1x8x16x48xf32> to vector<8x16x48xf32>
    %133 = vector.extract_strided_slice %8 {offsets = [1, 0], sizes = [1, 48], strides = [1, 1]} : vector<9x48xf32> to vector<1x48xf32>
    %134 = vector.shape_cast %133 : vector<1x48xf32> to vector<48xf32>
    %135 = vector.shape_cast %134 : vector<48xf32> to vector<1x1x48xf32>
    %136 = vector.broadcast %135 : vector<1x1x48xf32> to vector<8x16x48xf32>
    %137 = arith.mulf %132, %136 : vector<8x16x48xf32>
    %138 = arith.addf %130, %137 : vector<8x16x48xf32>
    %c0_91 = arith.constant 0 : index
    %c8_92 = arith.constant 8 : index
    %c9_93 = arith.constant 9 : index
    %c0_94 = arith.constant 0 : index
    %139 = vector.load %arg9[%c0_91, %c8_92, %c9_93, %c0_94] : memref<1x18x25x48xf32, #tpu.memory_space<vmem>>, vector<1x8x16x48xf32>
    %140 = vector.shape_cast %139 : vector<1x8x16x48xf32> to vector<8x16x48xf32>
    %141 = vector.extract_strided_slice %8 {offsets = [2, 0], sizes = [1, 48], strides = [1, 1]} : vector<9x48xf32> to vector<1x48xf32>
    %142 = vector.shape_cast %141 : vector<1x48xf32> to vector<48xf32>
    %143 = vector.shape_cast %142 : vector<48xf32> to vector<1x1x48xf32>
    %144 = vector.broadcast %143 : vector<1x1x48xf32> to vector<8x16x48xf32>
    %145 = arith.mulf %140, %144 : vector<8x16x48xf32>
    %146 = arith.addf %138, %145 : vector<8x16x48xf32>
    %c0_95 = arith.constant 0 : index
    %c9_96 = arith.constant 9 : index
    %c7_97 = arith.constant 7 : index
    %c0_98 = arith.constant 0 : index
    %147 = vector.load %arg9[%c0_95, %c9_96, %c7_97, %c0_98] : memref<1x18x25x48xf32, #tpu.memory_space<vmem>>, vector<1x8x16x48xf32>
    %148 = vector.shape_cast %147 : vector<1x8x16x48xf32> to vector<8x16x48xf32>
    %149 = vector.extract_strided_slice %8 {offsets = [3, 0], sizes = [1, 48], strides = [1, 1]} : vector<9x48xf32> to vector<1x48xf32>
    %150 = vector.shape_cast %149 : vector<1x48xf32> to vector<48xf32>
    %151 = vector.shape_cast %150 : vector<48xf32> to vector<1x1x48xf32>
    %152 = vector.broadcast %151 : vector<1x1x48xf32> to vector<8x16x48xf32>
    %153 = arith.mulf %148, %152 : vector<8x16x48xf32>
    %154 = arith.addf %146, %153 : vector<8x16x48xf32>
    %c0_99 = arith.constant 0 : index
    %c9_100 = arith.constant 9 : index
    %c8_101 = arith.constant 8 : index
    %c0_102 = arith.constant 0 : index
    %155 = vector.load %arg9[%c0_99, %c9_100, %c8_101, %c0_102] : memref<1x18x25x48xf32, #tpu.memory_space<vmem>>, vector<1x8x16x48xf32>
    %156 = vector.shape_cast %155 : vector<1x8x16x48xf32> to vector<8x16x48xf32>
    %157 = vector.extract_strided_slice %8 {offsets = [4, 0], sizes = [1, 48], strides = [1, 1]} : vector<9x48xf32> to vector<1x48xf32>
    %158 = vector.shape_cast %157 : vector<1x48xf32> to vector<48xf32>
    %159 = vector.shape_cast %158 : vector<48xf32> to vector<1x1x48xf32>
    %160 = vector.broadcast %159 : vector<1x1x48xf32> to vector<8x16x48xf32>
    %161 = arith.mulf %156, %160 : vector<8x16x48xf32>
    %162 = arith.addf %154, %161 : vector<8x16x48xf32>
    %c0_103 = arith.constant 0 : index
    %c9_104 = arith.constant 9 : index
    %c9_105 = arith.constant 9 : index
    %c0_106 = arith.constant 0 : index
    %163 = vector.load %arg9[%c0_103, %c9_104, %c9_105, %c0_106] : memref<1x18x25x48xf32, #tpu.memory_space<vmem>>, vector<1x8x16x48xf32>
    %164 = vector.shape_cast %163 : vector<1x8x16x48xf32> to vector<8x16x48xf32>
    %165 = vector.extract_strided_slice %8 {offsets = [5, 0], sizes = [1, 48], strides = [1, 1]} : vector<9x48xf32> to vector<1x48xf32>
    %166 = vector.shape_cast %165 : vector<1x48xf32> to vector<48xf32>
    %167 = vector.shape_cast %166 : vector<48xf32> to vector<1x1x48xf32>
    %168 = vector.broadcast %167 : vector<1x1x48xf32> to vector<8x16x48xf32>
    %169 = arith.mulf %164, %168 : vector<8x16x48xf32>
    %170 = arith.addf %162, %169 : vector<8x16x48xf32>
    %c0_107 = arith.constant 0 : index
    %c10 = arith.constant 10 : index
    %c7_108 = arith.constant 7 : index
    %c0_109 = arith.constant 0 : index
    %171 = vector.load %arg9[%c0_107, %c10, %c7_108, %c0_109] : memref<1x18x25x48xf32, #tpu.memory_space<vmem>>, vector<1x8x16x48xf32>
    %172 = vector.shape_cast %171 : vector<1x8x16x48xf32> to vector<8x16x48xf32>
    %173 = vector.extract_strided_slice %8 {offsets = [6, 0], sizes = [1, 48], strides = [1, 1]} : vector<9x48xf32> to vector<1x48xf32>
    %174 = vector.shape_cast %173 : vector<1x48xf32> to vector<48xf32>
    %175 = vector.shape_cast %174 : vector<48xf32> to vector<1x1x48xf32>
    %176 = vector.broadcast %175 : vector<1x1x48xf32> to vector<8x16x48xf32>
    %177 = arith.mulf %172, %176 : vector<8x16x48xf32>
    %178 = arith.addf %170, %177 : vector<8x16x48xf32>
    %c0_110 = arith.constant 0 : index
    %c10_111 = arith.constant 10 : index
    %c8_112 = arith.constant 8 : index
    %c0_113 = arith.constant 0 : index
    %179 = vector.load %arg9[%c0_110, %c10_111, %c8_112, %c0_113] : memref<1x18x25x48xf32, #tpu.memory_space<vmem>>, vector<1x8x16x48xf32>
    %180 = vector.shape_cast %179 : vector<1x8x16x48xf32> to vector<8x16x48xf32>
    %181 = vector.extract_strided_slice %8 {offsets = [7, 0], sizes = [1, 48], strides = [1, 1]} : vector<9x48xf32> to vector<1x48xf32>
    %182 = vector.shape_cast %181 : vector<1x48xf32> to vector<48xf32>
    %183 = vector.shape_cast %182 : vector<48xf32> to vector<1x1x48xf32>
    %184 = vector.broadcast %183 : vector<1x1x48xf32> to vector<8x16x48xf32>
    %185 = arith.mulf %180, %184 : vector<8x16x48xf32>
    %186 = arith.addf %178, %185 : vector<8x16x48xf32>
    %c0_114 = arith.constant 0 : index
    %c10_115 = arith.constant 10 : index
    %c9_116 = arith.constant 9 : index
    %c0_117 = arith.constant 0 : index
    %187 = vector.load %arg9[%c0_114, %c10_115, %c9_116, %c0_117] : memref<1x18x25x48xf32, #tpu.memory_space<vmem>>, vector<1x8x16x48xf32>
    %188 = vector.shape_cast %187 : vector<1x8x16x48xf32> to vector<8x16x48xf32>
    %189 = vector.extract_strided_slice %8 {offsets = [8, 0], sizes = [1, 48], strides = [1, 1]} : vector<9x48xf32> to vector<1x48xf32>
    %190 = vector.shape_cast %189 : vector<1x48xf32> to vector<48xf32>
    %191 = vector.shape_cast %190 : vector<48xf32> to vector<1x1x48xf32>
    %192 = vector.broadcast %191 : vector<1x1x48xf32> to vector<8x16x48xf32>
    %193 = arith.mulf %188, %192 : vector<8x16x48xf32>
    %194 = arith.addf %186, %193 : vector<8x16x48xf32>
    %195 = vector.shape_cast %10 : vector<48xf32> to vector<1x1x48xf32>
    %196 = vector.broadcast %195 : vector<1x1x48xf32> to vector<8x16x48xf32>
    %197 = arith.addf %194, %196 : vector<8x16x48xf32>
    %cst_118 = arith.constant 0.000000e+00 : f32
    %cst_119 = arith.constant 6.000000e+00 : f32
    %198 = vector.broadcast %cst_118 : f32 to vector<8x16x48xf32>
    %199 = arith.maximumf %198, %197 : vector<8x16x48xf32>
    %200 = vector.broadcast %cst_119 : f32 to vector<8x16x48xf32>
    %201 = arith.minimumf %200, %199 : vector<8x16x48xf32>
    %202 = vector.shape_cast %201 : vector<8x16x48xf32> to vector<128x48xf32>
    %cst_120 = arith.constant dense<0.000000e+00> : vector<128x128xf32>
    %203 = tpu.matmul %202, %11, %cst_120 {dimension_numbers = #tpu.dot_dimension_numbers<[1], [0], [0], [1], [0, 0, 1, 1], [], []>} : vector<128x48xf32>, vector<48x128xf32>, vector<128x128xf32> -> vector<128x128xf32>
    %204 = vector.broadcast %12 : vector<1x128xf32> to vector<128x128xf32>
    %205 = arith.addf %203, %204 : vector<128x128xf32>
    %c0_121 = arith.constant 0 : index
    %c0_122 = arith.constant 0 : index
    %c128 = arith.constant 128 : index
    %c0_123 = arith.constant 0 : index
    %206 = vector.load %arg1[%c0_121, %c0_122, %c128, %c0_123] : memref<1x1x256x8xf32, #tpu.memory_space<vmem>>, vector<1x1x128x8xf32>
    %207 = vector.shape_cast %206 : vector<1x1x128x8xf32> to vector<128x8xf32>
    %cst_124 = arith.constant 0.000000e+00 : f32
    %208 = vector.broadcast %cst_124 : f32 to vector<128x120xf32>
    %209 = tpu.concatenate %207, %208 in 1 : vector<128x8xf32>, vector<128x120xf32> -> vector<128x128xf32>
    %210 = arith.addf %205, %209 : vector<128x128xf32>
    %c0_125 = arith.constant 0 : index
    %c128_126 = arith.constant 128 : index
    %c0_127 = arith.constant 0 : index
    %211 = vector.load %arg8[%c0_125, %c128_126, %c0_127] : memref<1x256x128xf32, #tpu.memory_space<vmem>>, vector<1x128x128xf32>
    %212 = vector.shape_cast %211 : vector<1x128x128xf32> to vector<128x128xf32>
    %213 = vector.shape_cast %210 : vector<128x128xf32> to vector<1x128x128xf32>
    tpu.vector_store %arg8[%c0_125, %c128_126, %c0_127], %213 {strides = array<i32>} : memref<1x256x128xf32, #tpu.memory_space<vmem>>, vector<1x128x128xf32>,
    return
  }
  func.func @transform_0(%arg0: i32) -> (i32, i32, i32, i32) {
    %c0_i32 = arith.constant 0 : i32
    %c0_i32_0 = arith.constant 0 : i32
    %c0_i32_1 = arith.constant 0 : i32
    %c0_i32_2 = arith.constant 0 : i32
    return %arg0, %c0_i32, %c0_i32_0, %c0_i32_1 : i32, i32, i32, i32
  }
  func.func @transform_1(%arg0: i32) -> (i32, i32) {
    %c0_i32 = arith.constant 0 : i32
    %c0_i32_0 = arith.constant 0 : i32
    %c0_i32_1 = arith.constant 0 : i32
    return %c0_i32, %c0_i32_0 : i32, i32
  }
  func.func @transform_2(%arg0: i32) -> (i32, i32) {
    %c0_i32 = arith.constant 0 : i32
    %c0_i32_0 = arith.constant 0 : i32
    %c0_i32_1 = arith.constant 0 : i32
    return %c0_i32, %c0_i32_0 : i32, i32
  }
  func.func @transform_3(%arg0: i32) -> (i32, i32) {
    %c0_i32 = arith.constant 0 : i32
    %c0_i32_0 = arith.constant 0 : i32
    %c0_i32_1 = arith.constant 0 : i32
    return %c0_i32, %c0_i32_0 : i32, i32
  }
  func.func @transform_4(%arg0: i32) -> (i32, i32) {
    %c0_i32 = arith.constant 0 : i32
    %c0_i32_0 = arith.constant 0 : i32
    %c0_i32_1 = arith.constant 0 : i32
    return %c0_i32, %c0_i32_0 : i32, i32
  }
  func.func @transform_5(%arg0: i32) -> (i32, i32) {
    %c0_i32 = arith.constant 0 : i32
    %c0_i32_0 = arith.constant 0 : i32
    %c0_i32_1 = arith.constant 0 : i32
    return %c0_i32, %c0_i32_0 : i32, i32
  }
  func.func @transform_6(%arg0: i32) -> (i32, i32) {
    %c0_i32 = arith.constant 0 : i32
    %c0_i32_0 = arith.constant 0 : i32
    %c0_i32_1 = arith.constant 0 : i32
    return %c0_i32, %c0_i32_0 : i32, i32
  }
  func.func @transform_7(%arg0: i32) -> (i32, i32, i32) {
    %c0_i32 = arith.constant 0 : i32
    %c0_i32_0 = arith.constant 0 : i32
    %c0_i32_1 = arith.constant 0 : i32
    return %arg0, %c0_i32, %c0_i32_0 : i32, i32, i32
  }
}

</mosaic_0001>

<bundles_post_ra>
// kernel: tpu_custom_call.1
= control target key start
LH: loop header
LB: loop body
LE: loop exit
PB: predicated region body
PF: predicated region fallthrough
CT: control target
= control target key end

     0   :  { %12 = vsyncpa [#allocation4], 0  ;;  %s4102_s0 = inlined_call_operand.vmem [shape: f32[2,1,256,8], index: 0, kind: input, shape index: {}]   ;;  %s4103_s1 = inlined_call_operand.vmem [shape: f32[8,48], index: 1, kind: input, shape index: {}]   ;;  %s4104_s2 = inlined_call_operand.vmem [shape: f32[1,48], index: 2, kind: input, shape index: {}]   ;;  %s4105_s3 = inlined_call_operand.vmem [shape: f32[9,48], index: 3, kind: input, shape index: {}]   ;;  %s4106_s4 = inlined_call_operand.vmem [shape: f32[1,48], index: 4, kind: input, shape index: {}]   ;;  %s4107_s5 = inlined_call_operand.vmem [shape: f32[48,128], index: 5, kind: input, shape index: {}]   ;;  %s4108_s6 = inlined_call_operand.vmem [shape: f32[1,128], index: 6, kind: input, shape index: {}]   ;;  %s4109_s7 = inlined_call_operand.hbm [shape: f32[2,256,128], index: 7, kind: output, shape index: {}]  }
   0x1   :  { %14 = vsyncpa [#allocation4 + $0x1], 0  ;;  %s2858_s24 = smov 0   ;;  %s2860_s25 = smov 0  }
   0x2   :  { %s2862_s26 = smov 0   ;;  %s2864_s27 = smov 0  }
   0x3 LB: > { %s2879_s28 = sadd.s32 4294967295, %s2812_s27   ;;  %s2395_s29 = sadd.s32 4294967294, %s2812_s27   ;;  %s2812_s27 = sphi %s2864_s27, %s4115_s27   ;;  %s2808_s26 = sphi %s2862_s26, %s4114_s26   ;;  %s2804_s25 = sphi %s2860_s25, %s4113_s25   ;;  %s2800_s24 = sphi %s2858_s24, %s4112_s24  }
   0x4   : > { %s2883_s30 = sadd.s32 1, %s2812_s27   ;;  %s179_s8 = sadd.s32 1, %s2808_s26 }
   0x5   : > { %s176_s9 = ssub.s32 %s2812_s27, %s2883_s30  ;;  %p189_p0 = scmp.ne.s32.totalorder %s2808_s26, %s2804_s25 }
   0x6   : > { %p177_p1 = scmp.eq.s32.totalorder %s176_s9, 0  ;;  %p190_p2 = scmp.eq.s32.totalorder %s2879_s28, 1 }
   0x7   : > { %p195_p3 = scmp.ne.s32.totalorder %s2804_s25, %s2800_s24  ;;  %p196_p4 = scmp.eq.s32.totalorder %s2395_s29, 1 }
   0x8   : > { %s2894_s10 = scalar_select %p177_p1, %s2808_s26, %s179_s8  }
   0x9   : > { %p2896_p5 = por %p190_p2, %p189_p0  ;;  %p2900_p6 = por %p196_p4, %p195_p3 }
   0xa   : > { %p2398_p7 = scmp.ge.s32.totalorder %s2812_s27, 1  ;;  %p240_p8 = scmp.lt.s32.totalorder %s2812_s27, 3 }
   0xc   : > { %p241_p9 = pnand %p2398_p7, %p240_p8 }
   0xd   : > { %v366_v0 = vld [vmem:[%s4103_s1] sm:$0xff] (!%p241_p9)  ;;  %p272_p10 = scmp.lt.s32.totalorder (!%p241_p9), %s2879_s28, 1  ;;  %vm374_vm0 = vcmask (!%p241_p9), 64512   ;;  %vm277_vm1 = vcmask (!%p241_p9), 392192   ;;  %v2814_v33 = vmov (!%p241_p9), 0.0   ;;  %vm281_vm2 = vcmask (!%p241_p9), 385024  }
   0xe   : > { %244 = sbr.rel (%p241_p9) target bundleno = 674 (0x2a2), region = 48  ;;  %2554 = vmatprep.subr.mxu0 (!%p241_p9), %v366_v0  ;;  %278 = vst.msk [vmem:[#allocation2] sm:$0xff] (!%p241_p9), %vm277_vm1, %v2814_v33  ;;  %279 = vst.msk [vmem:[#allocation2 + $0x8] sm:$0xff] (!%p241_p9), %vm277_vm1, %v2814_v33  ;;  %v327_v34 = vld [vmem:[%s4107_s5] sm:$0xff] (!%p241_p9)  ;;  %v328_v35 = vld [vmem:[%s4107_s5 + $0x8] sm:$0xff] (!%p241_p9)  ;;  %v809_v43 = vlaneseq (!%p241_p9)  ;;  %s269_s17 = sand.u32 (!%p241_p9), 1, %s2804_s25  }
   0xf   : > { %2555 = vmatpush3.msra.mxu0 (!%p241_p9), %v366_v0  ;;  %280 = vst.msk [vmem:[#allocation2 + $0x10] sm:$0xff] (!%p241_p9), %vm277_vm1, %v2814_v33  ;;  %284 = vst.msk [vmem:[#allocation2 + $0x220] sm:$0xff] (!%p241_p9), %vm277_vm1, %v2814_v33  ;;  %v3030_v36 = vpack.c.bf16 (!%p241_p9), %v328_v35, %v327_v34  ;;  %v329_v37 = vld [vmem:[%s4107_s5 + $0x10] sm:$0xff] (!%p241_p9)  ;;  %v330_v38 = vld [vmem:[%s4107_s5 + $0x18] sm:$0xff] (!%p241_p9)  ;;  %s2399_s21 = sshll.u32 (!%p241_p9), %s269_s17, 8  ;;  %s2476_s23 = sshll.u32 (!%p241_p9), %s2879_s28, 12 }
  0x10   : > { %285 = vst.msk [vmem:[#allocation2 + $0x228] sm:$0xff] (!%p241_p9), %vm277_vm1, %v2814_v33  ;;  %286 = vst.msk [vmem:[#allocation2 + $0x230] sm:$0xff] (!%p241_p9), %vm277_vm1, %v2814_v33  ;;  %v3042_v39 = vpack.c.bf16 (!%p241_p9), %v330_v38, %v329_v37  ;;  %v331_v40 = vld [vmem:[%s4107_s5 + $0x20] sm:$0xff] (!%p241_p9)  ;;  %v332_v41 = vld [vmem:[%s4107_s5 + $0x28] sm:$0xff] (!%p241_p9)  ;;  %v3061_v44 = vshrl.u32 (!%p241_p9), %v809_v43, 7  ;;  %s3926_s22 = scalar_lea.vmem (!%p241_p9), [#allocation3], %s2399_s21  ;;  %s4053_s13 = scalar_lea.hbm (!%p241_p9), %s4109_s7, %s2476_s23 }
  0x11   : > { %288 = vst.msk [vmem:[#allocation2 + $0x7] sm:$0x1] (!%p241_p9), %vm281_vm2, %v2814_v33  ;;  %289 = vst.msk [vmem:[#allocation2 + $0x27] sm:$0x1] (!%p241_p9), %vm281_vm2, %v2814_v33  ;;  %2677 = vmatprep.subr.bf16.mxu0 (!%p241_p9), %v3030_v36  ;;  %2700 = vmatprep.subr.bf16.mxu1 (!%p241_p9), %v3030_v36  ;;  %v3054_v42 = vpack.c.bf16 (!%p241_p9), %v332_v41, %v331_v40  ;;  %v3068_v47 = vld [vmem:[%s4105_s3] sm:$0xff] (!%p241_p9)  ;;  %s2333_s29 = sshll.u32 (!%p241_p9), %s3926_s22, 4  ;;  %s4055_s29 = int_to_ptr.vmem [resolvable:$true] %s2333_s29 }
  0x12   : > { %290 = vst.msk [vmem:[#allocation2 + $0x47] sm:$0x1] (!%p241_p9), %vm281_vm2, %v2814_v33  ;;  %282 = vst.msk [vmem:[#allocation2 + $0x18] sm:$0x1] (!%p241_p9), %vm281_vm2, %v2814_v33  ;;  %2703 = vmatpush3.bf16.msra.mxu1 (!%p241_p9), %v3030_v36  ;;  %v811_v45 = vsub.s32 (!%p241_p9), 0, %v3061_v44  ;;  %v863_v46 = vsub.s32 (!%p241_p9), 1, %v3061_v44 }
  0x13   : > { %287 = vst.msk [vmem:[#allocation2 + $0x238] sm:$0x1] (!%p241_p9), %vm281_vm2, %v2814_v33  ;;  %291 = vst.msk [vmem:[#allocation2 + $0x67] sm:$0x1] (!%p241_p9), %vm281_vm2, %v2814_v33  ;;  %2701 = vmatprep.subr.bf16.mxu1 (!%p241_p9), %v3042_v39  ;;  %v3073_v48 = vld [vmem:[%s4104_s2] ss:$0 sm:$0xff] (!%p241_p9) }
  0x14   : > { %292 = vst.msk [vmem:[#allocation2 + $0x87] sm:$0x1] (!%p241_p9), %vm281_vm2, %v2814_v33  ;;  %293 = vst.msk [vmem:[#allocation2 + $0xa7] sm:$0x1] (!%p241_p9), %vm281_vm2, %v2814_v33  ;;  %v3076_v50 = vrot.slane (!%p241_p9), %v3068_v47, %v811_v45  ;;  %v3079_v51 = vrot.slane (!%p241_p9), %v3068_v47, %v863_v46  ;;  %v915_v56 = vsub.s32 (!%p241_p9), 2, %v3061_v44  ;;  %s2815_s14 = smov (!%p241_p9), [#allocation3]  }
  0x15   : > { %s273_s15 = scalar_select %p272_p10, %s2879_s28, 1  ;;  %294 = vst.msk [vmem:[#allocation2 + $0xc7] sm:$0x1] %vm281_vm2, %v2814_v33  ;;  %295 = vst.msk [vmem:[#allocation2 + $0xe7] sm:$0x1] %vm281_vm2, %v2814_v33  ;;  %v845_v55 = vld [vmem:[#allocation2 + $0x8] sm:$0xff] }
  0x16   : > { %296 = vst.msk [vmem:[#allocation2 + $0x107] sm:$0x1] %vm281_vm2, %v2814_v33  ;;  %297 = vst.msk [vmem:[#allocation2 + $0x127] sm:$0x1] %vm281_vm2, %v2814_v33  ;;  %2704 = vmatpush3.bf16.msra.mxu1 %v3042_v39  ;;  %v794_v59 = vld [vmem:[#allocation2 + $0xf] sm:$0xff]  ;;  %v865_v0 = vmul.f32 %v3079_v51, %v845_v55  ;;  %s4061_s28 = scalar_lea.sflag [#allocation4], %s269_s17 }
  0x17   : > { %s2475_s16 = sshll.u32 %s273_s15, 8  ;;  %298 = vst.msk [vmem:[#allocation2 + $0x147] sm:$0x1] %vm281_vm2, %v2814_v33  ;;  %299 = vst.msk [vmem:[#allocation2 + $0x167] sm:$0x1] %vm281_vm2, %v2814_v33  ;;  %2702 = vmatprep.subr.bf16.mxu1 %v3054_v42  ;;  %v846_v60 = vld [vmem:[#allocation2 + $0x10] sm:$0xff] }
  0x18   : > { %s2914_s19 = scalar_lea.vmem %s4102_s0, %s2475_s16  ;;  %300 = vst.msk [vmem:[#allocation2 + $0x187] sm:$0x1] %vm281_vm2, %v2814_v33  ;;  %301 = vst.msk [vmem:[#allocation2 + $0x1a7] sm:$0x1] %vm281_vm2, %v2814_v33  ;;  %v793_v54 = vld [vmem:[#allocation2 + $0x7] sm:$0xff]  ;;  %s2754_s15 = sshll.u32 %s2815_s14, 4  ;;  %s2755_s15 = int_to_ptr.vmem [resolvable:$false] %s2754_s15 }
  0x19   : > { %v334_v1 = vld [vmem:[%s2914_s19] sm:$0xff]  ;;  %v335_v2 = vld [vmem:[%s2914_s19 + $0x8] sm:$0xff]  ;;  %v336_v3 = vld [vmem:[%s2914_s19 + $0x10] sm:$0xff]  ;;  %302 = vst.msk [vmem:[#allocation2 + $0x1c7] sm:$0x1] %vm281_vm2, %v2814_v33  ;;  %v813_v63 = vmul.f32 %v3076_v50, %v793_v54  ;;  %s2756_s16 = scalar_lea.vmem %s2755_s15, 8192  ;;  %p2757_p0 = scmp.lt.s32.totalorder %s4055_s29, %s2755_s15 }
  0x1a   : > { %2556 = vmatprep.mubr.msk.f32.mxu0 %vm374_vm0, %v334_v1  ;;  %v337_v4 = vld [vmem:[%s2914_s19 + $0x18] sm:$0xff]  ;;  %v338_v5 = vld [vmem:[%s2914_s19 + $0x20] sm:$0xff]  ;;  %v339_v6 = vld [vmem:[%s2914_s19 + $0x28] sm:$0xff]  ;;  %303 = vst.msk [vmem:[#allocation2 + $0x1e7] sm:$0x1] %vm281_vm2, %v2814_v33  ;;  %2705 = vmatpush3.bf16.msra.mxu1 %v3054_v42 }
  0x1b   : > { %2557 = vmatmul.mubr.msk.f32.vlgmr.msra.gmra.mrb[0].mxu0 %vm374_vm0, %v335_v2  ;;  %v340_v7 = vld [vmem:[%s2914_s19 + $0x30] sm:$0xff]  ;;  %v341_v8 = vld [vmem:[%s2914_s19 + $0x38] sm:$0xff]  ;;  %v342_v9 = vld [vmem:[%s2914_s19 + $0x40] sm:$0xff]  ;;  %304 = vst.msk [vmem:[#allocation2 + $0x207] sm:$0x1] %vm281_vm2, %v2814_v33  ;;  %2689 = vmatprep.subr.bf16.mxu1 %v3030_v36 }
  0x1c   : > { %2559 = vmatprep.mubr.msk.f32.mxu0 %vm374_vm0, %v336_v3  ;;  %v343_v10 = vld [vmem:[%s2914_s19 + $0x48] sm:$0xff]  ;;  %v344_v11 = vld [vmem:[%s2914_s19 + $0x50] sm:$0xff]  ;;  %v345_v12 = vld [vmem:[%s2914_s19 + $0x58] sm:$0xff]  ;;  %307 = vst.msk [vmem:[#allocation2 + $0x38] sm:$0x1] %vm281_vm2, %v2814_v33  ;;  %2679 = vmatpush3.bf16.msra.mxu0 %v3030_v36 }
  0x1d   : > { %v346_v13 = vld [vmem:[%s2914_s19 + $0x60] sm:$0xff]  ;;  %v347_v14 = vld [vmem:[%s2914_s19 + $0x68] sm:$0xff]  ;;  %v348_v15 = vld [vmem:[%s2914_s19 + $0x70] sm:$0xff]  ;;  %308 = vst.msk [vmem:[#allocation2 + $0x58] sm:$0x1] %vm281_vm2, %v2814_v33  ;;  %2681 = vmatprep.subr.bf16.mxu0 %v3042_v39 }
  0x1e   : > { %v349_v16 = vld [vmem:[%s2914_s19 + $0x78] sm:$0xff]  ;;  %v350_v17 = vld [vmem:[%s2914_s19 + $0x80] sm:$0xff]  ;;  %v351_v18 = vld [vmem:[%s2914_s19 + $0x88] sm:$0xff]  ;;  %309 = vst.msk [vmem:[#allocation2 + $0x78] sm:$0x1] %vm281_vm2, %v2814_v33 }
  0x1f   : > { %2560 = vmatmul.mubr.msk.f32.gmra.mrb[2].mxu0 %vm374_vm0, %v337_v4  ;;  %v352_v19 = vld [vmem:[%s2914_s19 + $0x90] sm:$0xff]  ;;  %v353_v20 = vld [vmem:[%s2914_s19 + $0x98] sm:$0xff]  ;;  %v354_v21 = vld [vmem:[%s2914_s19 + $0xa0] sm:$0xff]  ;;  %310 = vst.msk [vmem:[#allocation2 + $0x98] sm:$0x1] %vm281_vm2, %v2814_v33  ;;  %v3088_v4 = vrot.slane %v3068_v47, %v915_v56 }
  0x20   : > { %2562 = vmatprep.mubr.msk.f32.mxu0 %vm374_vm0, %v338_v5  ;;  %v355_v22 = vld [vmem:[%s2914_s19 + $0xa8] sm:$0xff]  ;;  %v356_v23 = vld [vmem:[%s2914_s19 + $0xb0] sm:$0xff]  ;;  %v357_v24 = vld [vmem:[%s2914_s19 + $0xb8] sm:$0xff]  ;;  %311 = vst.msk [vmem:[#allocation2 + $0xb8] sm:$0x1] %vm281_vm2, %v2814_v33  ;;  %2683 = vmatpush3.bf16.msra.mxu0 %v3042_v39 }
  0x21   : > { %v358_v25 = vld [vmem:[%s2914_s19 + $0xc0] sm:$0xff]  ;;  %v359_v26 = vld [vmem:[%s2914_s19 + $0xc8] sm:$0xff]  ;;  %v360_v27 = vld [vmem:[%s2914_s19 + $0xd0] sm:$0xff]  ;;  %312 = vst.msk [vmem:[#allocation2 + $0xd8] sm:$0x1] %vm281_vm2, %v2814_v33  ;;  %2685 = vmatprep.subr.bf16.mxu0 %v3054_v42 }
  0x22   : > { %v361_v28 = vld [vmem:[%s2914_s19 + $0xd8] sm:$0xff]  ;;  %v362_v29 = vld [vmem:[%s2914_s19 + $0xe0] sm:$0xff]  ;;  %v363_v30 = vld [vmem:[%s2914_s19 + $0xe8] sm:$0xff]  ;;  %313 = vst.msk [vmem:[#allocation2 + $0xf8] sm:$0x1] %vm281_vm2, %v2814_v33 }
  0x23   : > { %2563 = vmatmul.mubr.msk.f32.gmra.mrb[4].mxu0 %vm374_vm0, %v339_v6  ;;  %v364_v31 = vld [vmem:[%s2914_s19 + $0xf0] sm:$0xff]  ;;  %v365_v32 = vld [vmem:[%s2914_s19 + $0xf8] sm:$0xff]  ;;  %314 = vst.msk [vmem:[#allocation2 + $0x118] sm:$0x1] %vm281_vm2, %v2814_v33  ;;  %315 = vst.msk [vmem:[#allocation2 + $0x138] sm:$0x1] %vm281_vm2, %v2814_v33 }
  0x24   : > { %2565 = vmatprep.mubr.msk.f32.mxu0 %vm374_vm0, %v340_v7  ;;  %316 = vst.msk [vmem:[#allocation2 + $0x158] sm:$0x1] %vm281_vm2, %v2814_v33  ;;  %317 = vst.msk [vmem:[#allocation2 + $0x178] sm:$0x1] %vm281_vm2, %v2814_v33  ;;  %2687 = vmatpush3.bf16.msra.mxu0 %v3054_v42  ;;  %v897_v7 = vld [vmem:[#allocation2 + $0x9] sm:$0xff] }
  0x25   : > { %318 = vst.msk [vmem:[#allocation2 + $0x198] sm:$0x1] %vm281_vm2, %v2814_v33  ;;  %319 = vst.msk [vmem:[#allocation2 + $0x1b8] sm:$0x1] %vm281_vm2, %v2814_v33 }
  0x26   : > { %320 = vst.msk [vmem:[#allocation2 + $0x1d8] sm:$0x1] %vm281_vm2, %v2814_v33  ;;  %321 = vst.msk [vmem:[#allocation2 + $0x1f8] sm:$0x1] %vm281_vm2, %v2814_v33 }
  0x27   : > { %2566 = vmatmul.mubr.msk.f32.gmra.mrb[6].mxu0 %vm374_vm0, %v341_v8  ;;  %322 = vst.msk [vmem:[#allocation2 + $0x218] sm:$0x1] %vm281_vm2, %v2814_v33  ;;  %305 = vst.msk [vmem:[#allocation2 + $0x227] sm:$0x1] %vm281_vm2, %v2814_v33  ;;  %v814_v8 = vmul.f32 %v3076_v50, %v794_v59 }
  0x28   : > { %2568 = vmatprep.mubr.msk.f32.mxu0 %vm374_vm0, %v342_v9  ;;  %306 = vst.msk [vmem:[#allocation2 + $0x18] sm:$0x1] %vm281_vm2, %v2814_v33  ;;  %323 = vst.msk [vmem:[#allocation2 + $0x238] sm:$0x1] %vm281_vm2, %v2814_v33  ;;  %v866_v9 = vmul.f32 %v3079_v51, %v846_v60 }
  0x2b   : > { %2569 = vmatmul.mubr.msk.f32.gmra.mrb[8].mxu0 %vm374_vm0, %v343_v10 }
  0x2c   : > { %2571 = vmatprep.mubr.msk.f32.mxu0 %vm374_vm0, %v344_v11  ;;  %v1019_v11 = vsub.s32 4, %v3061_v44 }
  0x2f   : > { %2572 = vmatmul.mubr.msk.f32.gmra.mrb[10].mxu0 %vm374_vm0, %v345_v12  ;;  %v1071_v12 = vsub.s32 5, %v3061_v44 }
  0x30   : > { %2574 = vmatprep.mubr.msk.f32.mxu0 %vm374_vm0, %v346_v13  ;;  %v898_v13 = vld [vmem:[#allocation2 + $0x11] sm:$0xff] }
  0x33   : > { %2575 = vmatmul.mubr.msk.f32.gmra.mrb[12].mxu0 %vm374_vm0, %v347_v14 }
  0x34   : > { %2577 = vmatprep.mubr.msk.f32.mxu0 %vm374_vm0, %v348_v15 }
  0x37   : > { %2578 = vmatmul.mubr.msk.f32.gmra.mrb[14].mxu0 %vm374_vm0, %v349_v16  ;;  %v881_v16 = vadd.f32 %v865_v0, %v813_v63 }
  0x38   : > { %2580 = vmatprep.mubr.msk.f32.mxu0 %vm374_vm0, %v350_v17  ;;  %v967_v17 = vsub.s32 3, %v3061_v44 }
  0x3a   : > { %v3113_v33 = vrot.slane %v3068_v47, %v967_v17 }
  0x3b   : > { %2581 = vmatmul.mubr.msk.f32.gmra.mrb[16].mxu0 %vm374_vm0, %v351_v18 }
  0x3c   : > { %2583 = vmatprep.mubr.msk.f32.mxu0 %vm374_vm0, %v352_v19 }
  0x3f   : > { %2584 = vmatmul.mubr.msk.f32.gmra.mrb[18].mxu0 %vm374_vm0, %v353_v20 }
  0x40   : > { %2586 = vmatprep.mubr.msk.f32.mxu0 %vm374_vm0, %v354_v21  ;;  %v917_v21 = vmul.f32 %v3088_v4, %v897_v7 }
  0x42   : > { %v933_v38 = vadd.f32 %v917_v21, %v881_v16 }
  0x43   : > { %2587 = vmatmul.mubr.msk.f32.gmra.mrb[20].mxu0 %vm374_vm0, %v355_v22  ;;  %v1176_v22 = vsub.s32 7, %v3061_v44 }
  0x44   : > { %2589 = vmatprep.mubr.msk.f32.mxu0 %vm374_vm0, %v356_v23 }
  0x45   : > { %v3118_v43 = vrot.slane %v3068_v47, %v1176_v22 }
  0x47   : > { %2590 = vmatmul.mubr.msk.f32.gmra.mrb[22].mxu0 %vm374_vm0, %v357_v24 }
  0x48   : > { %2592 = vmatprep.mubr.msk.f32.mxu0 %vm374_vm0, %v358_v25  ;;  %v882_v25 = vadd.f32 %v866_v9, %v814_v8 }
  0x4b   : > { %2593 = vmatmul.mubr.msk.f32.gmra.mrb[24].mxu0 %vm374_vm0, %v359_v26  ;;  %v918_v26 = vmul.f32 %v3088_v4, %v898_v13 }
  0x4c   : > { %2595 = vmatprep.mubr.msk.f32.mxu0 %vm374_vm0, %v360_v27 }
  0x4d   : > { %v934_v45 = vadd.f32 %v918_v26, %v882_v25 }
  0x4f   : > { %2596 = vmatmul.mubr.msk.f32.gmra.mrb[26].mxu0 %vm374_vm0, %v361_v28  ;;  %v3105_v28 = vrot.slane %v3068_v47, %v1019_v11 }
  0x50   : > { %2598 = vmatprep.mubr.msk.f32.mxu0 %vm374_vm0, %v362_v29  ;;  %v3108_v29 = vrot.slane %v3068_v47, %v1071_v12 }
  0x53   : > { %2599 = vmatmul.mubr.msk.f32.gmra.mrb[28].mxu0 %vm374_vm0, %v363_v30  ;;  %v1124_v30 = vsub.s32 6, %v3061_v44 }
  0x54   : > { %2601 = vmatprep.mubr.msk.f32.mxu0 %vm374_vm0, %v364_v31 }
  0x55   : > { %v3124_v55 = vrot.slane %v3068_v47, %v1124_v30 }
  0x57   : > { %2602 = vmatmul.mubr.msk.f32.gmra.mrb[30].mxu0 %vm374_vm0, %v365_v32 }
  0xee   : > { %v2558_v49 = vpop.f32.mrb[0].mxu0 }
  0xef   : > { %v543_v52 = vadd.f32 %v2558_v49, %v3073_v48  ;;  %v537_v53 = vpop.f32.mrb[1].mxu0 }
  0xf0   : > { %v538_v57 = vadd.f32 %v3073_v48, %v537_v53 }
  0xf1   : > { %v697_v58 = vmax.f32 %v543_v52, 0.0 }
  0xf2   : > { %v696_v61 = vmax.f32 %v538_v57, 0.0  ;;  %v2561_v62 = vpop.f32.mrb[2].mxu0 }
  0xf3   : > { %v729_v1 = vmin.f32 %v697_v58, 6.0  ;;  %v553_v2 = vadd.f32 %v2561_v62, %v3073_v48  ;;  %v547_v3 = vpop.f32.mrb[3].mxu0 }
  0xf4   : > { %v728_v5 = vmin.f32 %v696_v61, 6.0  ;;  %v548_v6 = vadd.f32 %v3073_v48, %v547_v3 }
  0xf5   : > { %762 = vst.msk [vmem:[#allocation2 + $0x30] sm:$0xff] %vm277_vm1, %v729_v1  ;;  %v699_v10 = vmax.f32 %v553_v2, 0.0  ;;  %v3141_v2 = vld [vmem:[%s4105_s3 + $0x8] ss:$0 sm:$0xff] }
  0xf6   : > { %761 = vst.msk [vmem:[#allocation2 + $0x28] sm:$0xff] %vm277_vm1, %v728_v5  ;;  %v698_v14 = vmax.f32 %v548_v6, 0.0  ;;  %v2564_v15 = vpop.f32.mrb[4].mxu0 }
  0xf7   : > { %v731_v18 = vmin.f32 %v699_v10, 6.0  ;;  %v563_v19 = vadd.f32 %v2564_v15, %v3073_v48  ;;  %v557_v20 = vpop.f32.mrb[5].mxu0 }
  0xf8   : > { %v730_v23 = vmin.f32 %v698_v14, 6.0  ;;  %v558_v24 = vadd.f32 %v3073_v48, %v557_v20 }
  0xf9   : > { %764 = vst.msk [vmem:[#allocation2 + $0x50] sm:$0xff] %vm277_vm1, %v731_v18  ;;  %v701_v27 = vmax.f32 %v563_v19, 0.0 }
  0xfa   : > { %763 = vst.msk [vmem:[#allocation2 + $0x48] sm:$0xff] %vm277_vm1, %v730_v23  ;;  %v700_v31 = vmax.f32 %v558_v24, 0.0  ;;  %v2567_v32 = vpop.f32.mrb[6].mxu0 }
  0xfb   : > { %v733_v34 = vmin.f32 %v701_v27, 6.0  ;;  %v573_v35 = vadd.f32 %v2567_v32, %v3073_v48  ;;  %v567_v37 = vpop.f32.mrb[7].mxu0 }
  0xfc   : > { %v732_v40 = vmin.f32 %v700_v31, 6.0  ;;  %v568_v41 = vadd.f32 %v3073_v48, %v567_v37  ;;  %v1002_v44 = vld [vmem:[#allocation2 + $0x30] sm:$0xff] }
  0xfd   : > { %v3120_v46 = vld [vmem:[#allocation2 + $0x31] sm:$0xff]  ;;  %766 = vst.msk [vmem:[#allocation2 + $0x70] sm:$0xff] %vm277_vm1, %v733_v34  ;;  %v703_v49 = vmax.f32 %v573_v35, 0.0  ;;  %v949_v52 = vld [vmem:[#allocation2 + $0x27] sm:$0xff]  ;;  %v1022_v56 = vmul.f32 %v3105_v28, %v1002_v44  ;;  %v3135_v63 = vmul.f32 %v1002_v44, %v3079_v51 }
  0xfe   : > { %v1001_v53 = vld [vmem:[#allocation2 + $0x28] sm:$0xff]  ;;  %v1074_v57 = vmul.f32 %v3108_v29, %v3120_v46  ;;  %765 = vst.msk [vmem:[#allocation2 + $0x68] sm:$0xff] %vm277_vm1, %v732_v40  ;;  %v702_v58 = vmax.f32 %v568_v41, 0.0  ;;  %v2570_v59 = vpop.f32.mrb[8].mxu0  ;;  %v969_v60 = vmul.f32 %v3113_v33, %v949_v52  ;;  %v815_v11 = vmul.f32 %v949_v52, %v3076_v50 }
  0xff   : > { %v1053_v54 = vld [vmem:[#allocation2 + $0x29] sm:$0xff]  ;;  %v1021_v61 = vmul.f32 %v3105_v28, %v1001_v53  ;;  %v735_v47 = vmin.f32 %v703_v49, 6.0  ;;  %v583_v0 = vadd.f32 %v2570_v59, %v3073_v48  ;;  %v577_v1 = vpop.f32.mrb[9].mxu0  ;;  %v867_v17 = vmul.f32 %v1001_v53, %v3079_v51 }
 0x100   : > { %v3132_v62 = vld [vmem:[#allocation2 + $0x2f] sm:$0xff]  ;;  %v1073_v3 = vmul.f32 %v3108_v29, %v1053_v54  ;;  %v734_v6 = vmin.f32 %v702_v58, 6.0  ;;  %v578_v7 = vadd.f32 %v3073_v48, %v577_v1  ;;  %v985_v8 = vadd.f32 %v969_v60, %v933_v38 }
 0x101   : > { %v970_v5 = vmul.f32 %v3113_v33, %v3132_v62  ;;  %v3147_v9 = vld [vmem:[#allocation2 + $0x50] sm:$0xff]  ;;  %768 = vst.msk [vmem:[#allocation2 + $0x90] sm:$0xff] %vm277_vm1, %v735_v47  ;;  %v705_v12 = vmax.f32 %v583_v0, 0.0  ;;  %v3153_v13 = vld [vmem:[#allocation2 + $0x47] sm:$0xff]  ;;  %v883_v41 = vadd.f32 %v867_v17, %v815_v11 }
 0x102   : > { %v3149_v10 = vld [vmem:[#allocation2 + $0x51] sm:$0xff]  ;;  %v3155_v14 = vld [vmem:[#allocation2 + $0x48] sm:$0xff]  ;;  %v1179_v16 = vmul.f32 %v3118_v43, %v3147_v9  ;;  %767 = vst.msk [vmem:[#allocation2 + $0x88] sm:$0xff] %vm277_vm1, %v734_v6  ;;  %v704_v18 = vmax.f32 %v578_v7, 0.0  ;;  %v2573_v19 = vpop.f32.mrb[10].mxu0  ;;  %v1037_v20 = vadd.f32 %v1021_v61, %v985_v8  ;;  %v1126_v21 = vmul.f32 %v3124_v55, %v3153_v13 }
 0x103   : > { %v986_v15 = vadd.f32 %v970_v5, %v934_v45  ;;  %v3163_v22 = vld [vmem:[#allocation2 + $0x4f] sm:$0xff]  ;;  %v1231_v23 = vmul.f32 %v3141_v2, %v3149_v10  ;;  %v737_v24 = vmin.f32 %v705_v12, 6.0  ;;  %v593_v25 = vadd.f32 %v2573_v19, %v3073_v48  ;;  %v587_v26 = vpop.f32.mrb[11].mxu0  ;;  %v3194_v7 = vld [vmem:[%s4106_s4] ss:$0 sm:$0xff] }
 0x104   : > { %v1178_v27 = vmul.f32 %v3118_v43, %v3155_v14  ;;  %v3170_v30 = vld [vmem:[#allocation2 + $0x49] sm:$0xff]  ;;  %v736_v32 = vmin.f32 %v704_v18, 6.0  ;;  %v588_v34 = vadd.f32 %v3073_v48, %v587_v26  ;;  %v1089_v35 = vadd.f32 %v1073_v3, %v1037_v20 }
 0x105   : > { %v1038_v31 = vadd.f32 %v1022_v56, %v986_v15  ;;  %v1127_v37 = vmul.f32 %v3124_v55, %v3163_v22  ;;  %770 = vst.msk [vmem:[#allocation2 + $0xb0] sm:$0xff] %vm277_vm1, %v737_v24  ;;  %v707_v38 = vmax.f32 %v593_v25, 0.0  ;;  %v919_v45 = vmul.f32 %v1053_v54, %v3088_v4  ;;  %v3183_v47 = vld [vmem:[#allocation2 + $0x67] sm:$0xff] }
 0x106   : > { %769 = vst.msk [vmem:[#allocation2 + $0xa8] sm:$0xff] %vm277_vm1, %v736_v32  ;;  %v706_v44 = vmax.f32 %v588_v34, 0.0  ;;  %v2576_v49 = vpop.f32.mrb[12].mxu0  ;;  %v1142_v52 = vadd.f32 %v1126_v21, %v1089_v35  ;;  %v1230_v53 = vmul.f32 %v3141_v2, %v3170_v30  ;;  %v971_v56 = vmul.f32 %v3153_v13, %v3113_v33  ;;  %v3185_v54 = vld [vmem:[#allocation2 + $0x68] sm:$0xff] }
 0x107   : > { %v1090_v40 = vadd.f32 %v1074_v57, %v1038_v31  ;;  %v739_v58 = vmin.f32 %v707_v38, 6.0  ;;  %v603_v59 = vadd.f32 %v2576_v49, %v3073_v48  ;;  %v597_v60 = vpop.f32.mrb[13].mxu0  ;;  %v935_v57 = vadd.f32 %v919_v45, %v883_v41 }
 0x108   : > { %v738_v0 = vmin.f32 %v706_v44, 6.0  ;;  %v598_v1 = vadd.f32 %v3073_v48, %v597_v60  ;;  %v1194_v3 = vadd.f32 %v1178_v27, %v1142_v52  ;;  %v1023_v5 = vmul.f32 %v3155_v14, %v3105_v28  ;;  %v3213_v44 = vld [vmem:[#allocation2 + $0x69] sm:$0xff] }
 0x109   : > { %v1143_v61 = vadd.f32 %v1127_v37, %v1090_v40  ;;  %772 = vst.msk [vmem:[#allocation2 + $0xd0] sm:$0xff] %vm277_vm1, %v739_v58  ;;  %v709_v6 = vmax.f32 %v603_v59, 0.0  ;;  %v987_v11 = vadd.f32 %v971_v56, %v935_v57  ;;  %v1075_v12 = vmul.f32 %v3170_v30, %v3108_v29 }
 0x10a   : > { %771 = vst.msk [vmem:[#allocation2 + $0xc8] sm:$0xff] %vm277_vm1, %v738_v0  ;;  %v708_v15 = vmax.f32 %v598_v1, 0.0  ;;  %v2579_v17 = vpop.f32.mrb[14].mxu0  ;;  %v1246_v18 = vadd.f32 %v1230_v53, %v1194_v3  ;;  %v1128_v19 = vmul.f32 %v3124_v55, %v3183_v47  ;;  %v1180_v20 = vmul.f32 %v3118_v43, %v3185_v54 }
 0x10b   : > { %v1195_v8 = vadd.f32 %v1179_v16, %v1143_v61  ;;  %v741_v21 = vmin.f32 %v709_v6, 6.0  ;;  %v613_v24 = vadd.f32 %v2579_v17, %v3073_v48  ;;  %v607_v25 = vpop.f32.mrb[15].mxu0  ;;  %v1039_v26 = vadd.f32 %v1023_v5, %v987_v11  ;;  %v3223_v5 = vld [vmem:[#allocation2 + $0x6f] sm:$0xff] }
 0x10c   : > { %v740_v27 = vmin.f32 %v708_v15, 6.0  ;;  %v608_v31 = vadd.f32 %v3073_v48, %v607_v25  ;;  %v1268_v32 = vadd.f32 %v3194_v7, %v1246_v18  ;;  %v816_v34 = vmul.f32 %v3132_v62, %v3076_v50 }
 0x10d   : > { %v1247_v16 = vadd.f32 %v1231_v23, %v1195_v8  ;;  %774 = vst.msk [vmem:[#allocation2 + $0xf0] sm:$0xff] %vm277_vm1, %v741_v21  ;;  %v711_v35 = vmax.f32 %v613_v24, 0.0  ;;  %v1091_v38 = vadd.f32 %v1075_v12, %v1039_v26  ;;  %v920_v40 = vmul.f32 %v3120_v46, %v3088_v4 }
 0x10e   : > { %773 = vst.msk [vmem:[#allocation2 + $0xe8] sm:$0xff] %vm277_vm1, %v740_v27  ;;  %v710_v23 = vmax.f32 %v608_v31, 0.0  ;;  %v2582_v41 = vpop.f32.mrb[16].mxu0  ;;  %v1284_v45 = vmax.f32 %v1268_v32, 0.0  ;;  %v884_v49 = vadd.f32 %v3135_v63, %v816_v34  ;;  %v972_v62 = vmul.f32 %v3163_v22, %v3113_v33  ;;  %v3238_v31 = vld [vmem:[#allocation2 + $0x70] sm:$0xff] }
 0x10f   : > { %v1269_v37 = vadd.f32 %v3194_v7, %v1247_v16  ;;  %v743_v52 = vmin.f32 %v711_v35, 6.0  ;;  %v623_v53 = vadd.f32 %v2582_v41, %v3073_v48  ;;  %v617_v56 = vpop.f32.mrb[17].mxu0  ;;  %v1144_v59 = vadd.f32 %v1128_v19, %v1091_v38 }
 0x110   : > { %v742_v60 = vmin.f32 %v710_v23, 6.0  ;;  %v618_v46 = vadd.f32 %v3073_v48, %v617_v56  ;;  %v1300_v61 = vmin.f32 %v1284_v45, 6.0  ;;  %v936_v57 = vadd.f32 %v920_v40, %v884_v49 }
 0x111   : > { %v1285_v58 = vmax.f32 %v1269_v37, 0.0  ;;  %776 = vst.msk [vmem:[#allocation2 + $0x110] sm:$0xff] %vm277_vm1, %v743_v52  ;;  %v713_v0 = vmax.f32 %v623_v53, 0.0  ;;  %v1196_v3 = vadd.f32 %v1180_v20, %v1144_v59  ;;  %v1232_v63 = vmul.f32 %v3141_v2, %v3213_v44 }
 0x112   : > { %775 = vst.msk [vmem:[#allocation2 + $0x108] sm:$0xff] %vm277_vm1, %v742_v60  ;;  %v712_v6 = vmax.f32 %v618_v46, 0.0  ;;  %v2585_v8 = vpop.f32.mrb[18].mxu0  ;;  %2616 = vmatprep.mubr.msk.f32.mxu0 %vm277_vm1, %v1300_v61  ;;  %v988_v11 = vadd.f32 %v972_v62, %v936_v57  ;;  %v1024_v12 = vmul.f32 %v3147_v9, %v3105_v28  ;;  %v1076_v20 = vmul.f32 %v3149_v10, %v3108_v29 }
 0x113   : > { %v1301_v1 = vmin.f32 %v1285_v58, 6.0  ;;  %v745_v15 = vmin.f32 %v713_v0, 6.0  ;;  %v633_v17 = vadd.f32 %v2585_v8, %v3073_v48  ;;  %v627_v18 = vpop.f32.mrb[19].mxu0  ;;  %v1248_v19 = vadd.f32 %v1232_v63, %v1196_v3  ;;  %v3263_v8 = vld [vmem:[#allocation2 + $0x87] sm:$0xff] }
 0x114   : > { %v744_v21 = vmin.f32 %v712_v6, 6.0  ;;  %v628_v24 = vadd.f32 %v3073_v48, %v627_v18  ;;  %v1040_v25 = vadd.f32 %v1024_v12, %v988_v11  ;;  %v1129_v16 = vmul.f32 %v3124_v55, %v3223_v5 }
 0x115   : > { %2617 = vmatmul.mubr.msk.f32.vlgmr.msra.gmra.mrb[32].mxu0 %vm277_vm1, %v1301_v1  ;;  %778 = vst.msk [vmem:[#allocation2 + $0x130] sm:$0xff] %vm277_vm1, %v745_v15  ;;  %v715_v26 = vmax.f32 %v633_v17, 0.0  ;;  %v1270_v27 = vadd.f32 %v3194_v7, %v1248_v19  ;;  %v817_v32 = vmul.f32 %v3153_v13, %v3076_v50  ;;  %v869_v34 = vmul.f32 %v3155_v14, %v3079_v51  ;;  %v3250_v13 = vld [vmem:[#allocation2 + $0x71] sm:$0xff] }
 0x116   : > { %777 = vst.msk [vmem:[#allocation2 + $0x128] sm:$0xff] %vm277_vm1, %v744_v21  ;;  %v714_v35 = vmax.f32 %v628_v24, 0.0  ;;  %v2588_v37 = vpop.f32.mrb[20].mxu0  ;;  %v1092_v38 = vadd.f32 %v1076_v20, %v1040_v25  ;;  %v921_v40 = vmul.f32 %v3170_v30, %v3088_v4  ;;  %v973_v23 = vmul.f32 %v3183_v47, %v3113_v33  ;;  %v3271_v24 = vld [vmem:[#allocation2 + $0x88] sm:$0xff] }
 0x117   : > { %v747_v41 = vmin.f32 %v715_v26, 6.0  ;;  %v643_v45 = vadd.f32 %v2588_v37, %v3073_v48  ;;  %v1286_v49 = vmax.f32 %v1270_v27, 0.0  ;;  %v637_v62 = vpop.f32.mrb[21].mxu0  ;;  %v885_v52 = vadd.f32 %v869_v34, %v817_v32  ;;  %v3273_v25 = vld [vmem:[#allocation2 + $0x89] sm:$0xff] }
 0x118   : > { %v746_v14 = vmin.f32 %v714_v35, 6.0  ;;  %v638_v53 = vadd.f32 %v3073_v48, %v637_v62  ;;  %v1145_v56 = vadd.f32 %v1129_v16, %v1092_v38  ;;  %v1181_v58 = vmul.f32 %v3118_v43, %v3238_v31  ;;  %v3289_v62 = vld [vmem:[#allocation2 + $0x8f] sm:$0xff] }
 0x119   : > { %780 = vst.msk [vmem:[#allocation2 + $0x150] sm:$0xff] %vm277_vm1, %v747_v41  ;;  %v717_v30 = vmax.f32 %v643_v45, 0.0  ;;  %v1302_v59 = vmin.f32 %v1286_v49, 6.0  ;;  %v937_v60 = vadd.f32 %v921_v40, %v885_v52  ;;  %v1233_v57 = vmul.f32 %v3141_v2, %v3250_v13 }
 0x11a   : > { %779 = vst.msk [vmem:[#allocation2 + $0x148] sm:$0xff] %vm277_vm1, %v746_v14  ;;  %v716_v46 = vmax.f32 %v638_v53, 0.0  ;;  %v1197_v61 = vadd.f32 %v1181_v58, %v1145_v56  ;;  %v2591_v0 = vpop.f32.mrb[22].mxu0  ;;  %v1025_v6 = vmul.f32 %v3185_v54, %v3105_v28  ;;  %v818_v18 = vmul.f32 %v3163_v22, %v3076_v50  ;;  %v3294_v53 = vld [vmem:[#allocation2 + $0x90] sm:$0xff] }
 0x11b   : > { %v749_v1 = vmin.f32 %v717_v30, 6.0  ;;  %2619 = vmatprep.mubr.msk.f32.mxu1 %vm277_vm1, %v1302_v59  ;;  %v653_v3 = vadd.f32 %v2591_v0, %v3073_v48  ;;  %v989_v63 = vadd.f32 %v973_v23, %v937_v60  ;;  %v647_v11 = vpop.f32.mrb[23].mxu0  ;;  %v1077_v21 = vmul.f32 %v3213_v44, %v3108_v29  ;;  %v3300_v59 = vld [vmem:[#allocation2 + $0x91] sm:$0xff] }
 0x11c   : > { %v748_v12 = vmin.f32 %v716_v46, 6.0  ;;  %v1249_v15 = vadd.f32 %v1233_v57, %v1197_v61  ;;  %v648_v17 = vadd.f32 %v3073_v48, %v647_v11  ;;  %v870_v16 = vmul.f32 %v3147_v9, %v3079_v51 }
 0x11d   : > { %782 = vst.msk [vmem:[#allocation2 + $0x170] sm:$0xff] %vm277_vm1, %v749_v1  ;;  %v719_v19 = vmax.f32 %v653_v3, 0.0  ;;  %v1041_v20 = vadd.f32 %v1025_v6, %v989_v63  ;;  %v1130_v22 = vmul.f32 %v3124_v55, %v3263_v8  ;;  %v922_v32 = vmul.f32 %v3149_v10, %v3088_v4 }
 0x11e   : > { %781 = vst.msk [vmem:[#allocation2 + $0x168] sm:$0xff] %vm277_vm1, %v748_v12  ;;  %v1271_v26 = vadd.f32 %v3194_v7, %v1249_v15  ;;  %v718_v27 = vmax.f32 %v648_v17, 0.0  ;;  %v2594_v34 = vpop.f32.mrb[24].mxu0  ;;  %v886_v38 = vadd.f32 %v870_v16, %v818_v18  ;;  %v974_v40 = vmul.f32 %v3223_v5, %v3113_v33 }
 0x11f   : > { %v751_v35 = vmin.f32 %v719_v19, 6.0  ;;  %v1093_v37 = vadd.f32 %v1077_v21, %v1041_v20  ;;  %v657_v23 = vpop.f32.mrb[25].mxu0  ;;  %v1182_v41 = vmul.f32 %v3118_v43, %v3271_v24  ;;  %v1234_v45 = vmul.f32 %v3141_v2, %v3273_v25  ;;  %v3320_v19 = vld [vmem:[#allocation2 + $0xa7] sm:$0xff] }
 0x120   : > { %v1287_v9 = vmax.f32 %v1271_v26, 0.0  ;;  %v750_v49 = vmin.f32 %v718_v27, 6.0  ;;  %v938_v52 = vadd.f32 %v922_v32, %v886_v38  ;;  %v1026_v14 = vmul.f32 %v3238_v31, %v3105_v28  ;;  %v3334_v32 = vld [vmem:[#allocation2 + $0xa8] sm:$0xff] }
 0x121   : > { %784 = vst.msk [vmem:[#allocation2 + $0x190] sm:$0xff] %vm277_vm1, %v751_v35  ;;  %v1146_v10 = vadd.f32 %v1130_v22, %v1093_v37  ;;  %v663_v56 = vadd.f32 %v2594_v34, %v3073_v48  ;;  %v1078_v30 = vmul.f32 %v3250_v13, %v3108_v29  ;;  %v819_v60 = vmul.f32 %v3183_v47, %v3076_v50  ;;  %v3336_v34 = vld [vmem:[#allocation2 + $0xa9] sm:$0xff] }
 0x122   : > { %v1303_v58 = vmin.f32 %v1287_v9, 6.0  ;;  %783 = vst.msk [vmem:[#allocation2 + $0x188] sm:$0xff] %vm277_vm1, %v750_v49  ;;  %v871_v46 = vmul.f32 %v3185_v54, %v3079_v51  ;;  %v2597_v61 = vpop.f32.mrb[26].mxu0  ;;  %v990_v0 = vadd.f32 %v974_v40, %v938_v52  ;;  %v1131_v1 = vmul.f32 %v3124_v55, %v3289_v62 }
 0x123   : > { %v1198_v57 = vadd.f32 %v1182_v41, %v1146_v10  ;;  %v721_v3 = vmax.f32 %v663_v56, 0.0  ;;  %v3308_v63 = vpop.f32.mrb[27].mxu0  ;;  %v1183_v6 = vmul.f32 %v3118_v43, %v3294_v53  ;;  %v923_v47 = vmul.f32 %v3213_v44, %v3088_v4 }
 0x124   : > { %2620 = vmatmul.mubr.msk.f32.vlgmr.msra.gmra.mrb[0].mxu1 %vm277_vm1, %v1303_v58  ;;  %v887_v11 = vadd.f32 %v871_v46, %v819_v60  ;;  %v975_v54 = vmul.f32 %v3263_v8, %v3113_v33  ;;  %v1042_v15 = vadd.f32 %v1026_v14, %v990_v0  ;;  %v1235_v17 = vmul.f32 %v3141_v2, %v3300_v59  ;;  %v3363_v0 = vld [vmem:[#allocation2 + $0xb0] sm:$0xff] }
 0x125   : > { %2691 = vmatpush3.bf16.msra.mxu1 %v3030_v36  ;;  %v1250_v12 = vadd.f32 %v1234_v45, %v1198_v57  ;;  %v753_v18 = vmin.f32 %v721_v3, 6.0  ;;  %v1027_v21 = vmul.f32 %v3271_v24, %v3105_v28  ;;  %v658_v16 = vadd.f32 %v3073_v48, %v657_v23  ;;  %v3361_v57 = vld [vmem:[#allocation2 + $0xaf] sm:$0xff] }
 0x126   : > { %v939_v20 = vadd.f32 %v923_v47, %v887_v11  ;;  %v820_v44 = vmul.f32 %v3223_v5, %v3076_v50  ;;  %2693 = vmatprep.subr.bf16.mxu1 %v3042_v39  ;;  %v3328_v36 = vpop.f32.mrb[28].mxu0  ;;  %v1094_v22 = vadd.f32 %v1078_v30, %v1042_v15  ;;  %v1079_v27 = vmul.f32 %v3273_v25, %v3108_v29 }
 0x127   : > { %v1272_v26 = vadd.f32 %v3194_v7, %v1250_v12  ;;  %786 = vst.msk [vmem:[#allocation2 + $0x1b0] sm:$0xff] %vm277_vm1, %v753_v18  ;;  %v872_v35 = vmul.f32 %v3238_v31, %v3079_v51  ;;  %v3340_v5 = vpop.f32.mrb[29].mxu0  ;;  %v1132_v38 = vmul.f32 %v3124_v55, %v3320_v19  ;;  %v720_v40 = vmax.f32 %v658_v16, 0.0 }
 0x128   : > { %v991_v37 = vadd.f32 %v975_v54, %v939_v20  ;;  %v924_v23 = vmul.f32 %v3250_v13, %v3088_v4  ;;  %v1147_v41 = vadd.f32 %v1131_v1, %v1094_v22  ;;  %v976_v49 = vmul.f32 %v3289_v62, %v3113_v33 }
 0x129   : > { %v1288_v9 = vmax.f32 %v1272_v26, 0.0  ;;  %v888_v45 = vadd.f32 %v872_v35, %v820_v44  ;;  %2695 = vmatpush3.bf16.msra.mxu1 %v3042_v39  ;;  %v1184_v31 = vmul.f32 %v3118_v43, %v3334_v32  ;;  %v1236_v52 = vmul.f32 %v3141_v2, %v3336_v34 }
 0x12a   : > { %v1043_v10 = vadd.f32 %v1027_v21, %v991_v37  ;;  %v752_v14 = vmin.f32 %v720_v40, 6.0  ;;  %2697 = vmatprep.subr.bf16.mxu1 %v3054_v42  ;;  %v3354_v56 = vpop.f32.mrb[30].mxu0  ;;  %v1199_v58 = vadd.f32 %v1183_v6, %v1147_v41  ;;  %v1028_v60 = vmul.f32 %v3294_v53, %v3105_v28 }
 0x12b   : > { %v1304_v13 = vmin.f32 %v1288_v9, 6.0  ;;  %v940_v30 = vadd.f32 %v924_v23, %v888_v45  ;;  %v3358_v46 = vpop.f32.mrb[31].mxu0  ;;  %v673_v1 = vadd.f32 %v2597_v61, %v3073_v48  ;;  %v821_v3 = vmul.f32 %v3263_v8, %v3076_v50 }
 0x12c   : > { %v1095_v39 = vadd.f32 %v1079_v27, %v1043_v10  ;;  %785 = vst.msk [vmem:[#allocation2 + $0x1a8] sm:$0xff] %vm277_vm1, %v752_v14  ;;  %v873_v6 = vmul.f32 %v3271_v24, %v3079_v51  ;;  %v1251_v11 = vadd.f32 %v1235_v17, %v1199_v58  ;;  %v1080_v54 = vmul.f32 %v3300_v59, %v3108_v29  ;;  %v3401_v14 = vld [vmem:[#allocation2 + $0xc8] sm:$0xff] }
 0x12d   : > { %2622 = vmatprep.mubr.msk.f32.mxu1 %vm277_vm1, %v1304_v13  ;;  %v992_v47 = vadd.f32 %v976_v49, %v940_v30  ;;  %v925_v12 = vmul.f32 %v3273_v25, %v3088_v4  ;;  %v723_v18 = vmax.f32 %v673_v1, 0.0  ;;  %v977_v61 = vmul.f32 %v3320_v19, %v3113_v33  ;;  %2699 = vmatpush3.bf16.msra.mxu1 %v3054_v42  ;;  %v3396_v49 = vld [vmem:[#allocation2 + $0xc7] sm:$0xff] }
 0x12e   : > { %v1148_v15 = vadd.f32 %v1132_v38, %v1095_v39  ;;  %v889_v20 = vadd.f32 %v873_v6, %v821_v3  ;;  %v1273_v8 = vadd.f32 %v3194_v7, %v1251_v11  ;;  %v1133_v17 = vmul.f32 %v3124_v55, %v3361_v57  ;;  %v3389_v38 = vld [vmem:[#allocation2 + $0xb1] sm:$0xff]  ;;  %v3410_v1 = vld [vmem:[#allocation2 + $0xc9] sm:$0xff] }
 0x12f   : > { %v1044_v24 = vadd.f32 %v1028_v60, %v992_v47  ;;  %v1185_v21 = vmul.f32 %v3118_v43, %v3363_v0  ;;  %v755_v44 = vmin.f32 %v723_v18, 6.0  ;;  %v1029_v26 = vmul.f32 %v3334_v32, %v3105_v28 }
 0x130   : > { %v1200_v16 = vadd.f32 %v1184_v31, %v1148_v15  ;;  %v941_v25 = vadd.f32 %v925_v12, %v889_v20  ;;  %v1289_v22 = vmax.f32 %v1273_v8, 0.0  ;;  %v1081_v42 = vmul.f32 %v3336_v34, %v3108_v29 }
 0x131   : > { %v1096_v27 = vadd.f32 %v1080_v54, %v1044_v24  ;;  %v668_v35 = vadd.f32 %v3073_v48, %v3308_v63  ;;  %788 = vst.msk [vmem:[#allocation2 + $0x1d0] sm:$0xff] %vm277_vm1, %v755_v44  ;;  %v822_v23 = vmul.f32 %v3289_v62, %v3076_v50  ;;  %v874_v9 = vmul.f32 %v3294_v53, %v3079_v51  ;;  %v3424_v24 = vld [vmem:[#allocation2 + $0xcf] sm:$0xff] }
 0x132   : > { %v1252_v37 = vadd.f32 %v1236_v52, %v1200_v16  ;;  %v993_v40 = vadd.f32 %v977_v61, %v941_v25  ;;  %v1305_v41 = vmin.f32 %v1289_v22, 6.0  ;;  %v926_v63 = vmul.f32 %v3300_v59, %v3088_v4  ;;  %v3433_v25 = vld [vmem:[#allocation2 + $0xd1] sm:$0xff] }
 0x133   : > { %v1149_v45 = vadd.f32 %v1133_v17, %v1096_v27  ;;  %v722_v10 = vmax.f32 %v668_v35, 0.0  ;;  %v890_v13 = vadd.f32 %v874_v9, %v822_v23  ;;  %v978_v62 = vmul.f32 %v3361_v57, %v3113_v33  ;;  %v3426_v17 = vld [vmem:[#allocation2 + $0xd0] sm:$0xff] }
 0x134   : > { %v1274_v31 = vadd.f32 %v3194_v7, %v1252_v37  ;;  %v1045_v52 = vadd.f32 %v1029_v26, %v993_v40  ;;  %2623 = vmatmul.mubr.msk.f32.gmra.mrb[2].mxu1 %vm277_vm1, %v1305_v41  ;;  %v1237_v58 = vmul.f32 %v3141_v2, %v3389_v38  ;;  %v1134_v59 = vmul.f32 %v3124_v55, %v3396_v49 }
 0x135   : > { %v1201_v53 = vadd.f32 %v1185_v21, %v1149_v45  ;;  %v754_v30 = vmin.f32 %v722_v10, 6.0  ;;  %v942_v3 = vadd.f32 %v926_v63, %v890_v13  ;;  %v1186_v11 = vmul.f32 %v3118_v43, %v3401_v14 }
 0x136   : > { %v1290_v60 = vmax.f32 %v1274_v31, 0.0  ;;  %v1097_v39 = vadd.f32 %v1081_v42, %v1045_v52  ;;  %v1030_v47 = vmul.f32 %v3363_v0, %v3105_v28  ;;  %v683_v54 = vadd.f32 %v3328_v36, %v3073_v48 }
 0x137   : > { %v1253_v6 = vadd.f32 %v1237_v58, %v1201_v53  ;;  %787 = vst.msk [vmem:[#allocation2 + $0x1c8] sm:$0xff] %vm277_vm1, %v754_v30  ;;  %v994_v18 = vadd.f32 %v978_v62, %v942_v3  ;;  %v823_v20 = vmul.f32 %v3320_v19, %v3076_v50  ;;  %v1238_v8 = vmul.f32 %v3141_v2, %v3410_v1  ;;  %v3456_v53 = vld [vmem:[#allocation2 + $0xe7] sm:$0xff] }
 0x138   : > { %v1306_v12 = vmin.f32 %v1290_v60, 6.0  ;;  %v1150_v15 = vadd.f32 %v1134_v59, %v1097_v39  ;;  %v725_v21 = vmax.f32 %v683_v54, 0.0  ;;  %v875_v16 = vmul.f32 %v3334_v32, %v3079_v51  ;;  %v3460_v39 = vld [vmem:[#allocation2 + $0xe8] sm:$0xff] }
 0x139   : > { %v1275_v61 = vadd.f32 %v3194_v7, %v1253_v6  ;;  %v1046_v44 = vadd.f32 %v1030_v47, %v994_v18  ;;  %v1082_v19 = vmul.f32 %v3389_v38, %v3108_v29  ;;  %v927_v26 = vmul.f32 %v3336_v34, %v3088_v4 }
 0x13a   : > { %2625 = vmatprep.mubr.msk.f32.mxu1 %vm277_vm1, %v1306_v12  ;;  %v1202_v36 = vadd.f32 %v1186_v11, %v1150_v15  ;;  %v757_v27 = vmin.f32 %v725_v21, 6.0  ;;  %v891_v42 = vadd.f32 %v875_v16, %v823_v20  ;;  %v979_v35 = vmul.f32 %v3396_v49, %v3113_v33 }
 0x13b   : > { %v1291_v22 = vmax.f32 %v1275_v61, 0.0  ;;  %v1098_v32 = vadd.f32 %v1082_v19, %v1046_v44  ;;  %v1135_v40 = vmul.f32 %v3124_v55, %v3424_v24  ;;  %v1187_v23 = vmul.f32 %v3118_v43, %v3426_v17 }
 0x13c   : > { %v1254_v37 = vadd.f32 %v1238_v8, %v1202_v36  ;;  %v1239_v41 = vmul.f32 %v3141_v2, %v3433_v25  ;;  %790 = vst.msk [vmem:[#allocation2 + $0x1f0] sm:$0xff] %vm277_vm1, %v757_v27  ;;  %v943_v34 = vadd.f32 %v927_v26, %v891_v42  ;;  %v678_v45 = vadd.f32 %v3073_v48, %v3340_v5  ;;  %v3477_v8 = vld [vmem:[#allocation2 + $0xe9] sm:$0xff] }
 0x13d   : > { %v1307_v9 = vmin.f32 %v1291_v22, 6.0  ;;  %v1151_v63 = vadd.f32 %v1135_v40, %v1098_v32  ;;  %v824_v31 = vmul.f32 %v3361_v57, %v3076_v50  ;;  %v876_v52 = vmul.f32 %v3363_v0, %v3079_v51  ;;  %v3481_v36 = vld [vmem:[#allocation2 + $0xef] sm:$0xff] }
 0x13e   : > { %v1276_v10 = vadd.f32 %v3194_v7, %v1254_v37  ;;  %v995_v13 = vadd.f32 %v979_v35, %v943_v34  ;;  %v1031_v62 = vmul.f32 %v3401_v14, %v3105_v28  ;;  %v724_v58 = vmax.f32 %v678_v45, 0.0 }
 0x13f   : > { %2626 = vmatmul.mubr.msk.f32.gmra.mrb[4].mxu1 %vm277_vm1, %v1307_v9  ;;  %v928_v5 = vmul.f32 %v3389_v38, %v3088_v4  ;;  %v1203_v60 = vadd.f32 %v1187_v23, %v1151_v63  ;;  %v892_v57 = vadd.f32 %v876_v52, %v824_v31  ;;  %v980_v0 = vmul.f32 %v3424_v24, %v3113_v33 }
 0x140   : > { %v1292_v30 = vmax.f32 %v1276_v10, 0.0  ;;  %v1047_v59 = vadd.f32 %v1031_v62, %v995_v13  ;;  %v1083_v3 = vmul.f32 %v3410_v1, %v3108_v29  ;;  %v756_v6 = vmin.f32 %v724_v58, 6.0  ;;  %v1221_v10 = vld [vmem:[#allocation2 + $0xf1] sm:$0xff] }
 0x141   : > { %v1255_v47 = vadd.f32 %v1239_v41, %v1203_v60  ;;  %v1136_v54 = vmul.f32 %v3124_v55, %v3456_v53  ;;  %v944_v12 = vadd.f32 %v928_v5, %v892_v57  ;;  %v1188_v15 = vmul.f32 %v3118_v43, %v3460_v39  ;;  %v3509_v5 = vld [vmem:[#allocation2 + $0x107] sm:$0xff] }
 0x142   : > { %v1308_v11 = vmin.f32 %v1292_v30, 6.0  ;;  %v1099_v38 = vadd.f32 %v1083_v3, %v1047_v59  ;;  %789 = vst.msk [vmem:[#allocation2 + $0x1e8] sm:$0xff] %vm277_vm1, %v756_v6  ;;  %v693_v18 = vadd.f32 %v3354_v56, %v3073_v48  ;;  %v825_v20 = vmul.f32 %v3396_v49, %v3076_v50  ;;  %v3487_v49 = vld [vmem:[#allocation2 + $0xf0] sm:$0xff] }
 0x143   : > { %v1277_v61 = vadd.f32 %v3194_v7, %v1255_v47  ;;  %v996_v21 = vadd.f32 %v980_v0, %v944_v12  ;;  %v1032_v16 = vmul.f32 %v3426_v17, %v3105_v28  ;;  %v877_v44 = vmul.f32 %v3401_v14, %v3079_v51 }
 0x144   : > { %2628 = vmatprep.mubr.msk.f32.mxu1 %vm277_vm1, %v1308_v11  ;;  %v1152_v19 = vadd.f32 %v1136_v54, %v1099_v38  ;;  %v1084_v56 = vmul.f32 %v3433_v25, %v3108_v29  ;;  %v727_v26 = vmax.f32 %v693_v18, 0.0  ;;  %v929_v22 = vmul.f32 %v3410_v1, %v3088_v4  ;;  %v3523_v11 = vld [vmem:[#allocation2 + $0x109] sm:$0xff] }
 0x145   : > { %v1293_v27 = vmax.f32 %v1277_v61, 0.0  ;;  %v1048_v42 = vadd.f32 %v1032_v16, %v996_v21  ;;  %v893_v35 = vadd.f32 %v877_v44, %v825_v20  ;;  %v981_v37 = vmul.f32 %v3456_v53, %v3113_v33  ;;  %v1119_v16 = vld [vmem:[#allocation2 + $0x10f] sm:$0xff] }
 0x146   : > { %v1204_v32 = vadd.f32 %v1188_v15, %v1152_v19  ;;  %v1240_v14 = vmul.f32 %v3141_v2, %v3477_v8  ;;  %v1137_v40 = vmul.f32 %v3124_v55, %v3481_v36  ;;  %v759_v23 = vmin.f32 %v727_v26, 6.0  ;;  %v1171_v44 = vld [vmem:[#allocation2 + $0x110] sm:$0xff] }
 0x147   : > { %v1309_v9 = vmin.f32 %v1293_v27, 6.0  ;;  %v1100_v41 = vadd.f32 %v1084_v56, %v1048_v42  ;;  %v1189_v34 = vmul.f32 %v3118_v43, %v3487_v49  ;;  %v945_v1 = vadd.f32 %v929_v22, %v893_v35 }
 0x148   : > { %v1256_v45 = vadd.f32 %v1240_v14, %v1204_v32  ;;  %792 = vst.msk [vmem:[#allocation2 + $0x210] sm:$0xff] %vm277_vm1, %v759_v23  ;;  %v688_v63 = vadd.f32 %v3073_v48, %v3358_v46  ;;  %v826_v31 = vmul.f32 %v3424_v24, %v3076_v50  ;;  %v878_v52 = vmul.f32 %v3426_v17, %v3079_v51  ;;  %v3514_v46 = vld [vmem:[#allocation2 + $0x108] sm:$0xff] }
 0x149   : > { %2629 = vmatmul.mubr.msk.f32.gmra.mrb[6].mxu1 %vm277_vm1, %v1309_v9  ;;  %v1153_v13 = vadd.f32 %v1137_v40, %v1100_v41  ;;  %v997_v62 = vadd.f32 %v981_v37, %v945_v1  ;;  %v1033_v58 = vmul.f32 %v3460_v39, %v3105_v28  ;;  %v930_v30 = vmul.f32 %v3433_v25, %v3088_v4  ;;  %v1223_v9 = vld [vmem:[#allocation2 + $0x111] sm:$0xff] }
 0x14a   : > { %v1278_v48 = vadd.f32 %v3194_v7, %v1256_v45  ;;  %v726_v24 = vmax.f32 %v688_v63, 0.0  ;;  %v894_v60 = vadd.f32 %v878_v52, %v826_v31  ;;  %v982_v17 = vmul.f32 %v3481_v36, %v3113_v33  ;;  %v3553_v52 = vld [vmem:[#allocation2 + $0x128] sm:$0xff] }
 0x14b   : > { %v1205_v57 = vadd.f32 %v1189_v34, %v1153_v13  ;;  %v1241_v0 = vmul.f32 %v3141_v2, %v1221_v10  ;;  %v1049_v59 = vadd.f32 %v1033_v58, %v997_v62  ;;  %v1085_v3 = vmul.f32 %v3477_v8, %v3108_v29  ;;  %v3545_v34 = vld [vmem:[#allocation2 + $0x127] sm:$0xff] }
 0x14c   : > { %v1294_v6 = vmax.f32 %v1278_v48, 0.0  ;;  %v1138_v25 = vmul.f32 %v3124_v55, %v3509_v5  ;;  %v758_v47 = vmin.f32 %v726_v24, 6.0  ;;  %v946_v54 = vadd.f32 %v930_v30, %v894_v60  ;;  %v3556_v30 = vld [vmem:[#allocation2 + $0x129] sm:$0xff] }
 0x14d   : > { %v1257_v12 = vadd.f32 %v1241_v0, %v1205_v57  ;;  %v1101_v38 = vadd.f32 %v1085_v3, %v1049_v59  ;;  %v1190_v15 = vmul.f32 %v3118_v43, %v3514_v46  ;;  %v827_v18 = vmul.f32 %v3456_v53, %v3076_v50 }
 0x14e   : > { %v1310_v20 = vmin.f32 %v1294_v6, 6.0  ;;  %791 = vst.msk [vmem:[#allocation2 + $0x208] sm:$0xff] %vm277_vm1, %v758_v47  ;;  %v998_v61 = vadd.f32 %v982_v17, %v946_v54  ;;  %v1034_v21 = vmul.f32 %v3487_v49, %v3105_v28  ;;  %v879_v19 = vmul.f32 %v3460_v39, %v3079_v51  ;;  %v1581_v54 = vld [vmem:[#allocation2 + $0x10f] sm:$0xff] }
 0x14f   : > { %v1279_v56 = vadd.f32 %v3194_v7, %v1257_v12  ;;  %v1154_v26 = vadd.f32 %v1138_v25, %v1101_v38  ;;  %v1242_v22 = vmul.f32 %v3141_v2, %v3523_v11  ;;  %v1086_v53 = vmul.f32 %v1221_v10, %v3108_v29 }
 0x150   : > { %2631 = vmatprep.mubr.msk.f32.mxu1 %vm277_vm1, %v1310_v20  ;;  %v1050_v27 = vadd.f32 %v1034_v21, %v998_v61  ;;  %v895_v42 = vadd.f32 %v879_v19, %v827_v18  ;;  %v931_v35 = vmul.f32 %v3477_v8, %v3088_v4  ;;  %v983_v37 = vmul.f32 %v3509_v5, %v3113_v33  ;;  %v3575_v20 = vld [vmem:[#allocation2 + $0x12f] sm:$0xff] }
 0x151   : > { %v1295_v32 = vmax.f32 %v1279_v56, 0.0  ;;  %v1206_v39 = vadd.f32 %v1190_v15, %v1154_v26  ;;  %v1139_v14 = vmul.f32 %v3124_v55, %v1119_v16  ;;  %v1191_v40 = vmul.f32 %v3118_v43, %v1171_v44  ;;  %v3577_v61 = vld [vmem:[#allocation2 + $0x130] sm:$0xff] }
 0x152   : > { %v1102_v23 = vadd.f32 %v1086_v53, %v1050_v27  ;;  %v947_v41 = vadd.f32 %v931_v35, %v895_v42  ;;  %v828_v1 = vmul.f32 %v3481_v36, %v3076_v50  ;;  %v880_v8 = vmul.f32 %v3487_v49, %v3079_v51  ;;  %v1629_v21 = vld [vmem:[#allocation2 + $0x110] sm:$0xff] }
 0x153   : > { %v1311_v45 = vmin.f32 %v1295_v32, 6.0  ;;  %v1258_v63 = vadd.f32 %v1242_v22, %v1206_v39  ;;  %v1035_v31 = vmul.f32 %v3514_v46, %v3105_v28  ;;  %v932_v13 = vmul.f32 %v1221_v10, %v3088_v4  ;;  %v1225_v39 = vld [vmem:[#allocation2 + $0x131] sm:$0xff] }
 0x154   : > { %v1155_v62 = vadd.f32 %v1139_v14, %v1102_v23  ;;  %v999_v58 = vadd.f32 %v983_v37, %v947_v41  ;;  %v896_v48 = vadd.f32 %v880_v8, %v828_v1  ;;  %v984_v24 = vmul.f32 %v1119_v16, %v3113_v33  ;;  %v3591_v14 = vld [vmem:[#allocation2 + $0x147] sm:$0xff] }
 0x155   : > { %2632 = vmatmul.mubr.msk.f32.gmra.mrb[8].mxu1 %vm277_vm1, %v1311_v45  ;;  %v1280_v36 = vadd.f32 %v3194_v7, %v1258_v63  ;;  %v1243_v49 = vmul.f32 %v3141_v2, %v1223_v9  ;;  %v1087_v60 = vmul.f32 %v3523_v11, %v3108_v29  ;;  %v1140_v17 = vmul.f32 %v3124_v55, %v3545_v34  ;;  %v3596_v1 = vld [vmem:[#allocation2 + $0x148] sm:$0xff] }
 0x156   : > { %v1207_v10 = vadd.f32 %v1191_v40, %v1155_v62  ;;  %v1051_v57 = vadd.f32 %v1035_v31, %v999_v58  ;;  %v1192_v0 = vmul.f32 %v3118_v43, %v3553_v52  ;;  %v948_v59 = vadd.f32 %v932_v13, %v896_v48  ;;  %v3601_v62 = vld [vmem:[#allocation2 + $0x149] sm:$0xff] }
 0x157   : > { %v1296_v3 = vmax.f32 %v1280_v36, 0.0  ;;  %v1244_v6 = vmul.f32 %v3141_v2, %v3556_v30  ;;  %v1596_v25 = vmul.f32 %v3509_v5, %v3076_v50  ;;  %v1644_v47 = vmul.f32 %v3514_v46, %v3079_v51 }
 0x158   : > { %v1259_v12 = vadd.f32 %v1243_v49, %v1207_v10  ;;  %v1103_v38 = vadd.f32 %v1087_v60, %v1051_v57  ;;  %v1000_v15 = vadd.f32 %v984_v24, %v948_v59  ;;  %v1036_v18 = vmul.f32 %v1171_v44, %v3105_v28 }
 0x159   : > { %v1312_v16 = vmin.f32 %v1296_v3, 6.0  ;;  %v1660_v19 = vadd.f32 %v1644_v47, %v1596_v25  ;;  %v1692_v56 = vmul.f32 %v3523_v11, %v3088_v4  ;;  %v1741_v5 = vmul.f32 %v3545_v34, %v3113_v33 }
 0x15a   : > { %v1281_v46 = vadd.f32 %v3194_v7, %v1259_v12  ;;  %v1156_v26 = vadd.f32 %v1140_v17, %v1103_v38  ;;  %v1052_v22 = vadd.f32 %v1036_v18, %v1000_v15  ;;  %v1088_v53 = vmul.f32 %v1223_v9, %v3108_v29  ;;  %v3625_v12 = vld [vmem:[#allocation2 + $0x14f] sm:$0xff] }
 0x15b   : > { %2634 = vmatprep.mubr.msk.f32.mxu1 %vm277_vm1, %v1312_v16  ;;  %v1141_v44 = vmul.f32 %v3124_v55, %v3575_v20  ;;  %v1193_v27 = vmul.f32 %v3118_v43, %v3577_v61  ;;  %v1708_v42 = vadd.f32 %v1692_v56, %v1660_v19  ;;  %v1597_v11 = vmul.f32 %v1581_v54, %v3076_v50  ;;  %v3627_v38 = vld [vmem:[#allocation2 + $0x150] sm:$0xff] }
 0x15c   : > { %v1297_v35 = vmax.f32 %v1281_v46, 0.0  ;;  %v1208_v37 = vadd.f32 %v1192_v0, %v1156_v26  ;;  %v1104_v32 = vadd.f32 %v1088_v53, %v1052_v22  ;;  %v1645_v40 = vmul.f32 %v1629_v21, %v3079_v51 }
 0x15d   : > { %v1757_v23 = vadd.f32 %v1741_v5, %v1708_v42  ;;  %v1789_v41 = vmul.f32 %v3553_v52, %v3105_v28  ;;  %v1693_v8 = vmul.f32 %v1223_v9, %v3088_v4  ;;  %v1742_v45 = vmul.f32 %v3575_v20, %v3113_v33 }
 0x15e   : > { %v1313_v63 = vmin.f32 %v1297_v35, 6.0  ;;  %v1260_v31 = vadd.f32 %v1244_v6, %v1208_v37  ;;  %v1157_v13 = vadd.f32 %v1141_v44, %v1104_v32  ;;  %v1661_v58 = vadd.f32 %v1645_v40, %v1597_v11  ;;  %v1967_v44 = vld [vmem:[#allocation2 + $0x151] sm:$0xff]  ;;  %v3646_v32 = vld [vmem:[#allocation2 + $0x167] sm:$0xff] }
 0x15f   : > { %v1245_v48 = vmul.f32 %v3141_v2, %v1225_v39  ;;  %v1805_v24 = vadd.f32 %v1789_v41, %v1757_v23  ;;  %v1837_v36 = vmul.f32 %v3556_v30, %v3108_v29  ;;  %v1886_v49 = vmul.f32 %v3591_v14, %v3124_v55  ;;  %v3615_v2 = vld [vmem:[%s4105_s3 + $0x8] ss:$0 sm:$0xff] }
 0x160   : > { %2635 = vmatmul.mubr.msk.f32.gmra.mrb[10].mxu1 %vm277_vm1, %v1313_v63  ;;  %v1282_v9 = vadd.f32 %v3194_v7, %v1260_v31  ;;  %v1209_v60 = vadd.f32 %v1193_v27, %v1157_v13  ;;  %v1934_v17 = vmul.f32 %v3596_v1, %v3118_v43  ;;  %v1709_v10 = vadd.f32 %v1693_v8, %v1661_v58  ;;  %v3648_v40 = vld [vmem:[#allocation2 + $0x168] sm:$0xff] }
 0x161   : > { %v1853_v57 = vadd.f32 %v1837_v36, %v1805_v24  ;;  %v1982_v0 = vmul.f32 %v3615_v2, %v3601_v62  ;;  %v1598_v59 = vmul.f32 %v3545_v34, %v3076_v50  ;;  %v1646_v3 = vmul.f32 %v3553_v52, %v3079_v51 }
 0x162   : > { %v1298_v6 = vmax.f32 %v1282_v9, 0.0  ;;  %v1261_v25 = vadd.f32 %v1245_v48, %v1209_v60  ;;  %v1758_v47 = vadd.f32 %v1742_v45, %v1709_v10  ;;  %v1790_v54 = vmul.f32 %v3577_v61, %v3105_v28  ;;  %v1968_v9 = vld [vmem:[#allocation2 + $0x169] sm:$0xff] }
 0x163   : > { %v1902_v15 = vadd.f32 %v1886_v49, %v1853_v57  ;;  %v1662_v18 = vadd.f32 %v1646_v3, %v1598_v59  ;;  %v1694_v21 = vmul.f32 %v3556_v30, %v3088_v4  ;;  %v1743_v34 = vmul.f32 %v3591_v14, %v3113_v33  ;;  %v3670_v59 = vld [vmem:[#allocation2 + $0x170] sm:$0xff] }
 0x164   : > { %v1314_v16 = vmin.f32 %v1298_v6, 6.0  ;;  %v1283_v52 = vadd.f32 %v3194_v7, %v1261_v25  ;;  %v1806_v19 = vadd.f32 %v1790_v54, %v1758_v47  ;;  %v1838_v56 = vmul.f32 %v1225_v39, %v3108_v29 }
 0x165   : > { %v1950_v5 = vadd.f32 %v1934_v17, %v1902_v15  ;;  %v1887_v46 = vmul.f32 %v3625_v12, %v3124_v55  ;;  %v1935_v26 = vmul.f32 %v3627_v38, %v3118_v43  ;;  %v1710_v22 = vadd.f32 %v1694_v21, %v1662_v18 }
 0x166   : > { %2637 = vmatprep.mubr.msk.f32.mxu1 %vm277_vm1, %v1314_v16  ;;  %v1299_v30 = vmax.f32 %v1283_v52, 0.0  ;;  %v1854_v53 = vadd.f32 %v1838_v56, %v1806_v19  ;;  %v1599_v27 = vmul.f32 %v3575_v20, %v3076_v50  ;;  %v1647_v42 = vmul.f32 %v3577_v61, %v3079_v51 }
 0x167   : > { %v1998_v11 = vadd.f32 %v1982_v0, %v1950_v5  ;;  %v1759_v35 = vadd.f32 %v1743_v34, %v1710_v22  ;;  %v1791_v37 = vmul.f32 %v3596_v1, %v3105_v28  ;;  %v1695_v23 = vmul.f32 %v1225_v39, %v3088_v4  ;;  %v3668_v0 = vld [vmem:[#allocation2 + $0x16f] sm:$0xff] }
 0x168   : > { %v1315_v41 = vmin.f32 %v1299_v30, 6.0  ;;  %v1903_v8 = vadd.f32 %v1887_v46, %v1854_v53  ;;  %v1663_v45 = vadd.f32 %v1647_v42, %v1599_v27  ;;  %v1744_v20 = vmul.f32 %v3625_v12, %v3113_v33  ;;  %v1969_v5 = vld [vmem:[#allocation2 + $0x171] sm:$0xff]  ;;  %v3695_v27 = vld [vmem:[#allocation2 + $0x187] sm:$0xff] }
 0x169   : > { %v2014_v63 = vadd.f32 %v3194_v7, %v1998_v11  ;;  %v1983_v61 = vmul.f32 %v3615_v2, %v1967_v44  ;;  %v1807_v31 = vadd.f32 %v1791_v37, %v1759_v35  ;;  %v1839_v13 = vmul.f32 %v3601_v62, %v3108_v29  ;;  %v3697_v42 = vld [vmem:[#allocation2 + $0x188] sm:$0xff] }
 0x16a   : > { %2638 = vmatmul.mubr.msk.f32.gmra.mrb[12].mxu1 %vm277_vm1, %v1315_v41  ;;  %v1951_v58 = vadd.f32 %v1935_v26, %v1903_v8  ;;  %v1888_v39 = vmul.f32 %v3646_v32, %v3124_v55  ;;  %v1936_v48 = vmul.f32 %v3648_v40, %v3118_v43  ;;  %v1711_v24 = vadd.f32 %v1695_v23, %v1663_v45 }
 0x16b   : > { %v2030_v36 = vmax.f32 %v2014_v63, 0.0  ;;  %v1855_v49 = vadd.f32 %v1839_v13, %v1807_v31  ;;  %v1600_v7 = vmul.f32 %v3591_v14, %v3076_v50  ;;  %v1648_v60 = vmul.f32 %v3596_v1, %v3079_v51  ;;  %v3679_v1 = vld [vmem:[%s4106_s4] ss:$0 sm:$0xff] }
 0x16c   : > { %v1999_v17 = vadd.f32 %v1983_v61, %v1951_v58  ;;  %v1760_v10 = vadd.f32 %v1744_v20, %v1711_v24  ;;  %v1792_v57 = vmul.f32 %v3627_v38, %v3105_v28  ;;  %v1696_v3 = vmul.f32 %v3601_v62, %v3088_v4  ;;  %v1970_v58 = vld [vmem:[#allocation2 + $0x189] sm:$0xff] }
 0x16d   : > { %v2046_v6 = vmin.f32 %v2030_v36, 6.0  ;;  %v1904_v25 = vadd.f32 %v1888_v39, %v1855_v49  ;;  %v1664_v47 = vadd.f32 %v1648_v60, %v1600_v7  ;;  %v1745_v14 = vmul.f32 %v3646_v32, %v3113_v33  ;;  %v3716_v7 = vld [vmem:[#allocation2 + $0x18f] sm:$0xff] }
 0x16e   : > { %v2015_v54 = vadd.f32 %v3679_v1, %v1999_v17  ;;  %v1984_v15 = vmul.f32 %v3615_v2, %v1968_v9  ;;  %v1808_v18 = vadd.f32 %v1792_v57, %v1760_v10  ;;  %v1840_v21 = vmul.f32 %v1967_v44, %v3108_v29  ;;  %v3718_v60 = vld [vmem:[#allocation2 + $0x190] sm:$0xff] }
 0x16f   : > { %2652 = vmatprep.mubr.msk.f32.mxu1 %vm277_vm1, %v2046_v6  ;;  %v1952_v62 = vadd.f32 %v1936_v48, %v1904_v25  ;;  %v1889_v34 = vmul.f32 %v3668_v0, %v3124_v55  ;;  %v1937_v16 = vmul.f32 %v3670_v59, %v3118_v43  ;;  %v1712_v52 = vadd.f32 %v1696_v3, %v1664_v47 }
 0x170   : > { %v2031_v19 = vmax.f32 %v2015_v54, 0.0  ;;  %v1856_v56 = vadd.f32 %v1840_v21, %v1808_v18  ;;  %v1601_v46 = vmul.f32 %v3625_v12, %v3076_v50  ;;  %v1649_v26 = vmul.f32 %v3627_v38, %v3079_v51 }
 0x171   : > { %v2000_v22 = vadd.f32 %v1984_v15, %v1952_v62  ;;  %v1761_v30 = vadd.f32 %v1745_v14, %v1712_v52  ;;  %v1793_v53 = vmul.f32 %v3648_v40, %v3105_v28  ;;  %v1697_v11 = vmul.f32 %v1967_v44, %v3088_v4  ;;  %v1971_v62 = vld [vmem:[#allocation2 + $0x191] sm:$0xff] }
 0x172   : > { %v2047_v35 = vmin.f32 %v2031_v19, 6.0  ;;  %v1905_v37 = vadd.f32 %v1889_v34, %v1856_v56  ;;  %v1665_v23 = vadd.f32 %v1649_v26, %v1601_v46  ;;  %v1746_v12 = vmul.f32 %v3668_v0, %v3113_v33  ;;  %v3737_v46 = vld [vmem:[#allocation2 + $0x1a7] sm:$0xff] }
 0x173   : > { %v2016_v41 = vadd.f32 %v3679_v1, %v2000_v22  ;;  %v1985_v38 = vmul.f32 %v3615_v2, %v1969_v5  ;;  %v1809_v8 = vadd.f32 %v1793_v53, %v1761_v30  ;;  %v1841_v45 = vmul.f32 %v1968_v9, %v3108_v29  ;;  %v3739_v26 = vld [vmem:[#allocation2 + $0x1a8] sm:$0xff] }
 0x174   : > { %2653 = vmatmul.mubr.msk.f32.vlgmr.msra.gmra.mrb[14].mxu1 %vm277_vm1, %v2047_v35  ;;  %v1953_v20 = vadd.f32 %v1937_v16, %v1905_v37  ;;  %v1890_v63 = vmul.f32 %v3695_v27, %v3124_v55  ;;  %v1938_v44 = vmul.f32 %v3697_v42, %v3118_v43  ;;  %v1713_v61 = vadd.f32 %v1697_v11, %v1665_v23 }
 0x175   : > { %v2032_v31 = vmax.f32 %v2016_v41, 0.0  ;;  %v1857_v13 = vadd.f32 %v1841_v45, %v1809_v8  ;;  %v1602_v39 = vmul.f32 %v3646_v32, %v3076_v50  ;;  %v1650_v48 = vmul.f32 %v3648_v40, %v3079_v51 }
 0x176   : > { %v2001_v24 = vadd.f32 %v1985_v38, %v1953_v20  ;;  %v1762_v36 = vadd.f32 %v1746_v12, %v1713_v61  ;;  %v1794_v49 = vmul.f32 %v3670_v59, %v3105_v28  ;;  %v1698_v17 = vmul.f32 %v1968_v9, %v3088_v4  ;;  %v1972_v20 = vld [vmem:[#allocation2 + $0x1a9] sm:$0xff] }
 0x177   : > { %v2048_v10 = vmin.f32 %v2032_v31, 6.0  ;;  %v1906_v57 = vadd.f32 %v1890_v63, %v1857_v13  ;;  %v1666_v3 = vadd.f32 %v1650_v48, %v1602_v39  ;;  %v1747_v32 = vmul.f32 %v3695_v27, %v3113_v33  ;;  %v3758_v39 = vld [vmem:[#allocation2 + $0x1af] sm:$0xff] }
 0x178   : > { %v2017_v6 = vadd.f32 %v3679_v1, %v2001_v24  ;;  %v1986_v40 = vmul.f32 %v3615_v2, %v1970_v58  ;;  %v1810_v25 = vadd.f32 %v1794_v49, %v1762_v36  ;;  %v1842_v47 = vmul.f32 %v1969_v5, %v3108_v29  ;;  %v3760_v48 = vld [vmem:[#allocation2 + $0x1b0] sm:$0xff] }
 0x179   : > { %2655 = vmatprep.mubr.msk.f32.mxu1 %vm277_vm1, %v2048_v10  ;;  %v1954_v14 = vadd.f32 %v1938_v44, %v1906_v57  ;;  %v1891_v54 = vmul.f32 %v3716_v7, %v3124_v55  ;;  %v1939_v9 = vmul.f32 %v3718_v60, %v3118_v43  ;;  %v1714_v15 = vadd.f32 %v1698_v17, %v1666_v3 }
 0x17a   : > { %v2033_v18 = vmax.f32 %v2017_v6, 0.0  ;;  %v1858_v21 = vadd.f32 %v1842_v47, %v1810_v25  ;;  %v1603_v34 = vmul.f32 %v3668_v0, %v3076_v50  ;;  %v1651_v16 = vmul.f32 %v3670_v59, %v3079_v51 }
 0x17b   : > { %v2002_v52 = vadd.f32 %v1986_v40, %v1954_v14  ;;  %v1763_v19 = vadd.f32 %v1747_v32, %v1714_v15  ;;  %v1795_v56 = vmul.f32 %v3697_v42, %v3105_v28  ;;  %v1699_v22 = vmul.f32 %v1969_v5, %v3088_v4  ;;  %v1973_v14 = vld [vmem:[#allocation2 + $0x1b1] sm:$0xff] }
 0x17c   : > { %v2049_v30 = vmin.f32 %v2033_v18, 6.0  ;;  %v1907_v53 = vadd.f32 %v1891_v54, %v1858_v21  ;;  %v1667_v11 = vadd.f32 %v1651_v16, %v1603_v34  ;;  %v1748_v0 = vmul.f32 %v3716_v7, %v3113_v33  ;;  %v3779_v34 = vld [vmem:[#allocation2 + $0x1c7] sm:$0xff] }
 0x17d   : > { %v2018_v35 = vadd.f32 %v3679_v1, %v2002_v52  ;;  %v1987_v59 = vmul.f32 %v3615_v2, %v1971_v62  ;;  %v1811_v37 = vadd.f32 %v1795_v56, %v1763_v19  ;;  %v1843_v23 = vmul.f32 %v1970_v58, %v3108_v29  ;;  %v3781_v16 = vld [vmem:[#allocation2 + $0x1c8] sm:$0xff] }
 0x17e   : > { %2656 = vmatmul.mubr.msk.f32.gmra.mrb[16].mxu1 %vm277_vm1, %v2049_v30  ;;  %v1955_v12 = vadd.f32 %v1939_v9, %v1907_v53  ;;  %v1892_v41 = vmul.f32 %v3737_v46, %v3124_v55  ;;  %v1940_v5 = vmul.f32 %v3739_v26, %v3118_v43  ;;  %v1715_v38 = vadd.f32 %v1699_v22, %v1667_v11 }
 0x17f   : > { %v2034_v8 = vmax.f32 %v2018_v35, 0.0  ;;  %v1859_v45 = vadd.f32 %v1843_v23, %v1811_v37  ;;  %v1604_v63 = vmul.f32 %v3695_v27, %v3076_v50  ;;  %v1652_v44 = vmul.f32 %v3697_v42, %v3079_v51 }
 0x180   : > { %v2003_v61 = vadd.f32 %v1987_v59, %v1955_v12  ;;  %v1764_v31 = vadd.f32 %v1748_v0, %v1715_v38  ;;  %v1796_v13 = vmul.f32 %v3718_v60, %v3105_v28  ;;  %v1700_v24 = vmul.f32 %v1970_v58, %v3088_v4  ;;  %v1974_v12 = vld [vmem:[#allocation2 + $0x1c9] sm:$0xff] }
 0x181   : > { %v2050_v36 = vmin.f32 %v2034_v8, 6.0  ;;  %v1908_v49 = vadd.f32 %v1892_v41, %v1859_v45  ;;  %v1668_v17 = vadd.f32 %v1652_v44, %v1604_v63  ;;  %v1749_v27 = vmul.f32 %v3737_v46, %v3113_v33  ;;  %v3800_v63 = vld [vmem:[#allocation2 + $0x1cf] sm:$0xff] }
 0x182   : > { %v2019_v10 = vadd.f32 %v3679_v1, %v2003_v61  ;;  %v1988_v42 = vmul.f32 %v3615_v2, %v1972_v20  ;;  %v1812_v57 = vadd.f32 %v1796_v13, %v1764_v31  ;;  %v1844_v3 = vmul.f32 %v1971_v62, %v3108_v29  ;;  %v3802_v44 = vld [vmem:[#allocation2 + $0x1d0] sm:$0xff] }
 0x183   : > { %2658 = vmatprep.mubr.msk.f32.mxu1 %vm277_vm1, %v2050_v36  ;;  %v1956_v32 = vadd.f32 %v1940_v5, %v1908_v49  ;;  %v1893_v6 = vmul.f32 %v3758_v39, %v3124_v55  ;;  %v1941_v58 = vmul.f32 %v3760_v48, %v3118_v43  ;;  %v1716_v40 = vadd.f32 %v1700_v24, %v1668_v17 }
 0x184   : > { %v2035_v25 = vmax.f32 %v2019_v10, 0.0  ;;  %v1860_v47 = vadd.f32 %v1844_v3, %v1812_v57  ;;  %v1605_v54 = vmul.f32 %v3716_v7, %v3076_v50  ;;  %v1653_v9 = vmul.f32 %v3718_v60, %v3079_v51 }
 0x185   : > { %v2004_v15 = vadd.f32 %v1988_v42, %v1956_v32  ;;  %v1765_v18 = vadd.f32 %v1749_v27, %v1716_v40  ;;  %v1797_v21 = vmul.f32 %v3739_v26, %v3105_v28  ;;  %v1701_v52 = vmul.f32 %v1971_v62, %v3088_v4  ;;  %v1975_v32 = vld [vmem:[#allocation2 + $0x1d1] sm:$0xff] }
 0x186   : > { %v2051_v19 = vmin.f32 %v2035_v25, 6.0  ;;  %v1909_v56 = vadd.f32 %v1893_v6, %v1860_v47  ;;  %v1669_v22 = vadd.f32 %v1653_v9, %v1605_v54  ;;  %v1750_v7 = vmul.f32 %v3758_v39, %v3113_v33  ;;  %v3821_v54 = vld [vmem:[#allocation2 + $0x1e7] sm:$0xff] }
 0x187   : > { %v2020_v30 = vadd.f32 %v3679_v1, %v2004_v15  ;;  %v1989_v60 = vmul.f32 %v3615_v2, %v1973_v14  ;;  %v1813_v53 = vadd.f32 %v1797_v21, %v1765_v18  ;;  %v1845_v11 = vmul.f32 %v1972_v20, %v3108_v29  ;;  %v3823_v9 = vld [vmem:[#allocation2 + $0x1e8] sm:$0xff] }
 0x188   : > { %2659 = vmatmul.mubr.msk.f32.gmra.mrb[18].mxu1 %vm277_vm1, %v2051_v19  ;;  %v1957_v0 = vadd.f32 %v1941_v58, %v1909_v56  ;;  %v1894_v35 = vmul.f32 %v3779_v34, %v3124_v55  ;;  %v1942_v62 = vmul.f32 %v3781_v16, %v3118_v43  ;;  %v1717_v59 = vadd.f32 %v1701_v52, %v1669_v22 }
 0x189   : > { %v2036_v37 = vmax.f32 %v2020_v30, 0.0  ;;  %v1861_v23 = vadd.f32 %v1845_v11, %v1813_v53  ;;  %v1606_v41 = vmul.f32 %v3737_v46, %v3076_v50  ;;  %v1654_v5 = vmul.f32 %v3739_v26, %v3079_v51 }
 0x18a   : > { %v2005_v38 = vadd.f32 %v1989_v60, %v1957_v0  ;;  %v1766_v8 = vadd.f32 %v1750_v7, %v1717_v59  ;;  %v1798_v45 = vmul.f32 %v3760_v48, %v3105_v28  ;;  %v1702_v61 = vmul.f32 %v1972_v20, %v3088_v4  ;;  %v1976_v0 = vld [vmem:[#allocation2 + $0x1e9] sm:$0xff] }
 0x18b   : > { %v2052_v31 = vmin.f32 %v2036_v37, 6.0  ;;  %v1910_v13 = vadd.f32 %v1894_v35, %v1861_v23  ;;  %v1670_v24 = vadd.f32 %v1654_v5, %v1606_v41  ;;  %v1751_v46 = vmul.f32 %v3779_v34, %v3113_v33  ;;  %v3842_v41 = vld [vmem:[#allocation2 + $0x1ef] sm:$0xff] }
 0x18c   : > { %v2021_v36 = vadd.f32 %v3679_v1, %v2005_v38  ;;  %v1990_v26 = vmul.f32 %v3615_v2, %v1974_v12  ;;  %v1814_v49 = vadd.f32 %v1798_v45, %v1766_v8  ;;  %v1846_v17 = vmul.f32 %v1973_v14, %v3108_v29  ;;  %v3844_v5 = vld [vmem:[#allocation2 + $0x1f0] sm:$0xff] }
 0x18d   : > { %2661 = vmatprep.mubr.msk.f32.mxu1 %vm277_vm1, %v2052_v31  ;;  %v1958_v27 = vadd.f32 %v1942_v62, %v1910_v13  ;;  %v1895_v10 = vmul.f32 %v3800_v63, %v3124_v55  ;;  %v1943_v20 = vmul.f32 %v3802_v44, %v3118_v43  ;;  %v1718_v42 = vadd.f32 %v1702_v61, %v1670_v24 }
 0x18e   : > { %v2037_v57 = vmax.f32 %v2021_v36, 0.0  ;;  %v1862_v3 = vadd.f32 %v1846_v17, %v1814_v49  ;;  %v1607_v6 = vmul.f32 %v3758_v39, %v3076_v50  ;;  %v1655_v58 = vmul.f32 %v3760_v48, %v3079_v51 }
 0x18f   : > { %v2006_v40 = vadd.f32 %v1990_v26, %v1958_v27  ;;  %v1767_v25 = vadd.f32 %v1751_v46, %v1718_v42  ;;  %v1799_v47 = vmul.f32 %v3781_v16, %v3105_v28  ;;  %v1703_v15 = vmul.f32 %v1973_v14, %v3088_v4  ;;  %v1977_v27 = vld [vmem:[#allocation2 + $0x1f1] sm:$0xff] }
 0x190   : > { %v2053_v18 = vmin.f32 %v2037_v57, 6.0  ;;  %v1911_v21 = vadd.f32 %v1895_v10, %v1862_v3  ;;  %v1671_v52 = vadd.f32 %v1655_v58, %v1607_v6  ;;  %v1752_v39 = vmul.f32 %v3800_v63, %v3113_v33  ;;  %v1882_v6 = vld [vmem:[#allocation2 + $0x207] sm:$0xff] }
 0x191   : > { %v2022_v19 = vadd.f32 %v3679_v1, %v2006_v40  ;;  %v1991_v48 = vmul.f32 %v3615_v2, %v1975_v32  ;;  %v1815_v56 = vadd.f32 %v1799_v47, %v1767_v25  ;;  %v1847_v22 = vmul.f32 %v1974_v12, %v3108_v29  ;;  %v1930_v58 = vld [vmem:[#allocation2 + $0x208] sm:$0xff] }
 0x192   : > { %2662 = vmatmul.mubr.msk.f32.gmra.mrb[20].mxu1 %vm277_vm1, %v2053_v18  ;;  %v1959_v7 = vadd.f32 %v1943_v20, %v1911_v21  ;;  %v1896_v30 = vmul.f32 %v3821_v54, %v3124_v55  ;;  %v1944_v14 = vmul.f32 %v3823_v9, %v3118_v43  ;;  %v1719_v60 = vadd.f32 %v1703_v15, %v1671_v52 }
 0x193   : > { %v2038_v53 = vmax.f32 %v2022_v19, 0.0  ;;  %v1863_v11 = vadd.f32 %v1847_v22, %v1815_v56  ;;  %v1608_v35 = vmul.f32 %v3779_v34, %v3076_v50  ;;  %v1656_v62 = vmul.f32 %v3781_v16, %v3079_v51 }
 0x194   : > { %v2007_v59 = vadd.f32 %v1991_v48, %v1959_v7  ;;  %v1768_v37 = vadd.f32 %v1752_v39, %v1719_v60  ;;  %v1800_v23 = vmul.f32 %v3802_v44, %v3105_v28  ;;  %v1704_v38 = vmul.f32 %v1974_v12, %v3088_v4  ;;  %v1978_v7 = vld [vmem:[#allocation2 + $0x209] sm:$0xff] }
 0x195   : > { %v2054_v8 = vmin.f32 %v2038_v53, 6.0  ;;  %v1912_v45 = vadd.f32 %v1896_v30, %v1863_v11  ;;  %v1672_v61 = vadd.f32 %v1656_v62, %v1608_v35  ;;  %v1753_v34 = vmul.f32 %v3821_v54, %v3113_v33  ;;  %v1883_v35 = vld [vmem:[#allocation2 + $0x20f] sm:$0xff] }
 0x196   : > { %v2023_v31 = vadd.f32 %v3679_v1, %v2007_v59  ;;  %v1992_v16 = vmul.f32 %v3615_v2, %v1976_v0  ;;  %v1816_v13 = vadd.f32 %v1800_v23, %v1768_v37  ;;  %v1848_v24 = vmul.f32 %v1975_v32, %v3108_v29  ;;  %v1931_v62 = vld [vmem:[#allocation2 + $0x210] sm:$0xff] }
 0x197   : > { %2664 = vmatprep.mubr.msk.f32.mxu1 %vm277_vm1, %v2054_v8  ;;  %v1960_v46 = vadd.f32 %v1944_v14, %v1912_v45  ;;  %v1897_v36 = vmul.f32 %v3842_v41, %v3124_v55  ;;  %v1945_v12 = vmul.f32 %v3844_v5, %v3118_v43  ;;  %v1720_v26 = vadd.f32 %v1704_v38, %v1672_v61 }
 0x198   : > { %v2039_v49 = vmax.f32 %v2023_v31, 0.0  ;;  %v1864_v17 = vadd.f32 %v1848_v24, %v1816_v13  ;;  %v1609_v10 = vmul.f32 %v3800_v63, %v3076_v50  ;;  %v1657_v20 = vmul.f32 %v3802_v44, %v3079_v51 }
 0x199   : > { %v2008_v42 = vadd.f32 %v1992_v16, %v1960_v46  ;;  %v1769_v57 = vadd.f32 %v1753_v34, %v1720_v26  ;;  %v1801_v3 = vmul.f32 %v3823_v9, %v3105_v28  ;;  %v1705_v40 = vmul.f32 %v1975_v32, %v3088_v4  ;;  %v1884_v46 = vld [vmem:[#allocation2 + $0x227] sm:$0xff] }
 0x19a   : > { %v2055_v25 = vmin.f32 %v2039_v49, 6.0  ;;  %v1913_v47 = vadd.f32 %v1897_v36, %v1864_v17  ;;  %v1673_v15 = vadd.f32 %v1657_v20, %v1609_v10  ;;  %v1754_v18 = vmul.f32 %v3842_v41, %v3113_v33  ;;  %v1979_v49 = vld [vmem:[#allocation2 + $0x211] sm:$0xff] }
 0x19b   : > { %v2024_v63 = vadd.f32 %v3679_v1, %v2008_v42  ;;  %v1993_v21 = vmul.f32 %v3615_v2, %v1977_v27  ;;  %v1817_v44 = vadd.f32 %v1801_v3, %v1769_v57  ;;  %v1849_v52 = vmul.f32 %v1976_v0, %v3108_v29  ;;  %v1932_v3 = vld [vmem:[#allocation2 + $0x228] sm:$0xff] }
 0x19c   : > { %2665 = vmatmul.mubr.msk.f32.gmra.mrb[22].mxu1 %vm277_vm1, %v2055_v25  ;;  %v1961_v39 = vadd.f32 %v1945_v12, %v1913_v47  ;;  %v1898_v19 = vmul.f32 %v1882_v6, %v3124_v55  ;;  %v1946_v32 = vmul.f32 %v1930_v58, %v3118_v43  ;;  %v1721_v48 = vadd.f32 %v1705_v40, %v1673_v15 }
 0x19d   : > { %v2040_v56 = vmax.f32 %v2024_v63, 0.0  ;;  %v1865_v22 = vadd.f32 %v1849_v52, %v1817_v44  ;;  %v1610_v30 = vmul.f32 %v3821_v54, %v3076_v50  ;;  %v1658_v14 = vmul.f32 %v3823_v9, %v3079_v51  ;;  %v1885_v63 = vld [vmem:[#allocation2 + $0x22f] sm:$0xff] }
 0x19e   : > { %v2009_v60 = vadd.f32 %v1993_v21, %v1961_v39  ;;  %v1770_v53 = vadd.f32 %v1754_v18, %v1721_v48  ;;  %v1802_v11 = vmul.f32 %v3844_v5, %v3105_v28  ;;  %v1706_v59 = vmul.f32 %v1976_v0, %v3088_v4 }
 0x19f   : > { %v2056_v37 = vmin.f32 %v2040_v56, 6.0  ;;  %v1914_v23 = vadd.f32 %v1898_v19, %v1865_v22  ;;  %v1674_v38 = vadd.f32 %v1658_v14, %v1610_v30  ;;  %v1755_v8 = vmul.f32 %v1882_v6, %v3113_v33  ;;  %v1981_v14 = vld [vmem:[#allocation2 + $0x231] sm:$0xff] }
 0x1a0   : > { %v2025_v45 = vadd.f32 %v3679_v1, %v2009_v60  ;;  %v1994_v54 = vmul.f32 %v3615_v2, %v1978_v7  ;;  %v1818_v61 = vadd.f32 %v1802_v11, %v1770_v53  ;;  %v1850_v9 = vmul.f32 %v1977_v27, %v3108_v29 }
 0x1a1   : > { %2667 = vmatprep.mubr.msk.f32.mxu1 %vm277_vm1, %v2056_v37  ;;  %v1962_v34 = vadd.f32 %v1946_v32, %v1914_v23  ;;  %v1899_v31 = vmul.f32 %v1883_v35, %v3124_v55  ;;  %v1947_v16 = vmul.f32 %v1931_v62, %v3118_v43  ;;  %v1722_v0 = vadd.f32 %v1706_v59, %v1674_v38  ;;  %v1933_v32 = vld [vmem:[#allocation2 + $0x230] sm:$0xff] }
 0x1a2   : > { %v2041_v13 = vmax.f32 %v2025_v45, 0.0  ;;  %v1866_v24 = vadd.f32 %v1850_v9, %v1818_v61  ;;  %v1611_v36 = vmul.f32 %v3842_v41, %v3076_v50  ;;  %v1659_v12 = vmul.f32 %v3844_v5, %v3079_v51  ;;  %v1515_v61 = vld [vmem:[%s2914_s19] sm:$0xff] }
 0x1a3   : > { %v2010_v26 = vadd.f32 %v1994_v54, %v1962_v34  ;;  %v1771_v17 = vadd.f32 %v1755_v8, %v1722_v0  ;;  %v1803_v10 = vmul.f32 %v1930_v58, %v3105_v28  ;;  %v1707_v20 = vmul.f32 %v1977_v27, %v3088_v4  ;;  %v1980_v58 = vld [vmem:[#allocation2 + $0x229] sm:$0xff]  ;;  %v3917_v54 = vld [vmem:[%s4108_s6] ss:$0 sm:$0xff] }
 0x1a4   : > { %v2057_v42 = vmin.f32 %v2041_v13, 6.0  ;;  %v1915_v57 = vadd.f32 %v1899_v31, %v1866_v24  ;;  %v1675_v6 = vadd.f32 %v1659_v12, %v1611_v36  ;;  %v1756_v40 = vmul.f32 %v1883_v35, %v3113_v33  ;;  %v1517_v36 = vld [vmem:[%s2914_s19 + $0x10] sm:$0xff] }
 0x1a5   : > { %v2026_v25 = vadd.f32 %v3679_v1, %v2010_v26  ;;  %v1819_v47 = vadd.f32 %v1803_v10, %v1771_v17  ;;  %v1851_v50 = vmul.f32 %v1978_v7, %v3108_v29  ;;  %v1900_v51 = vmul.f32 %v1884_v46, %v3124_v55  ;;  %v1518_v46 = vld [vmem:[%s2914_s19 + $0x18] sm:$0xff] }
 0x1a6   : > { %2668 = vmatmul.mubr.msk.f32.gmra.mrb[24].mxu1 %vm277_vm1, %v2057_v42  ;;  %v1963_v41 = vadd.f32 %v1947_v16, %v1915_v57  ;;  %v1995_v5 = vmul.f32 %v3615_v2, %v1979_v49  ;;  %v1723_v4 = vadd.f32 %v1707_v20, %v1675_v6  ;;  %v1948_v18 = vmul.f32 %v1932_v3, %v3118_v43  ;;  %v1520_v3 = vld [vmem:[%s2914_s19 + $0x28] sm:$0xff]  ;;  %v1519_v6 = vld [vmem:[%s2914_s19 + $0x20] sm:$0xff] }
 0x1a7   : > { %v2042_v27 = vmax.f32 %v2026_v25, 0.0  ;;  %v1867_v15 = vadd.f32 %v1851_v50, %v1819_v47  ;;  %v1804_v44 = vmul.f32 %v1931_v62, %v3105_v28  ;;  %v1996_v19 = vmul.f32 %v3615_v2, %v1980_v58 }
 0x1a8   : > { %v2011_v33 = vadd.f32 %v1995_v5, %v1963_v41  ;;  %v1772_v21 = vadd.f32 %v1756_v40, %v1723_v4  ;;  %v1852_v22 = vmul.f32 %v1979_v49, %v3108_v29  ;;  %v1901_v7 = vmul.f32 %v1885_v63, %v3124_v55  ;;  %v1522_v4 = vld [vmem:[%s2914_s19 + $0x38] sm:$0xff] }
 0x1a9   : > { %v2058_v52 = vmin.f32 %v2042_v27, 6.0  ;;  %v1916_v39 = vadd.f32 %v1900_v51, %v1867_v15  ;;  %v1949_v28 = vmul.f32 %v1933_v32, %v3118_v43  ;;  %v1997_v59 = vmul.f32 %v3615_v2, %v1981_v14  ;;  %v1516_v2 = vld [vmem:[%s2914_s19 + $0x8] sm:$0xff]  ;;  %v1521_v27 = vld [vmem:[%s2914_s19 + $0x30] sm:$0xff]  ;;  %v1523_v32 = vld [vmem:[%s2914_s19 + $0x40] sm:$0xff] }
 0x1aa   : > { %v2027_v48 = vadd.f32 %v3679_v1, %v2011_v33  ;;  %v1820_v56 = vadd.f32 %v1804_v44, %v1772_v21  ;;  %v1531_v16 = vsel %vm374_vm0, %v1515_v61, 0.0  ;;  %v1534_v26 = vsel %vm374_vm0, %v1518_v46, 0.0 }
 0x1ab   : > { %2670 = vmatprep.mubr.msk.f32.mxu1 %vm277_vm1, %v2058_v52  ;;  %v1964_v30 = vadd.f32 %v1948_v18, %v1916_v39  ;;  %v1533_v10 = vsel %vm374_vm0, %v1517_v36, 0.0  ;;  %v1536_v25 = vsel %vm374_vm0, %v1520_v3, 0.0  ;;  %v1535_v51 = vsel %vm374_vm0, %v1519_v6, 0.0 }
 0x1ac   : > { %v2043_v60 = vmax.f32 %v2027_v48, 0.0  ;;  %v1868_v53 = vadd.f32 %v1852_v22, %v1820_v56  ;;  %v1538_v18 = vsel %vm374_vm0, %v1522_v4, 0.0  ;;  %v1537_v21 = vsel %vm374_vm0, %v1521_v27, 0.0 }
 0x1ad   : > { %v2012_v11 = vadd.f32 %v1996_v19, %v1964_v30  ;;  %v1524_v19 = vld [vmem:[%s2914_s19 + $0x48] sm:$0xff]  ;;  %v1539_v30 = vsel %vm374_vm0, %v1523_v32, 0.0 }
 0x1ae   : > { %v2059_v35 = vmin.f32 %v2043_v60, 6.0  ;;  %v1917_v62 = vadd.f32 %v1901_v7, %v1868_v53  ;;  %v1540_v56 = vsel %vm374_vm0, %v1524_v19, 0.0 }
 0x1af   : > { %v2028_v29 = vadd.f32 %v3679_v1, %v2012_v11  ;;  %v1525_v11 = vld [vmem:[%s2914_s19 + $0x50] sm:$0xff] }
 0x1b0   : > { %2671 = vmatmul.mubr.msk.f32.gmra.mrb[26].mxu1 %vm277_vm1, %v2059_v35  ;;  %v1965_v55 = vadd.f32 %v1949_v28, %v1917_v62  ;;  %v1526_v28 = vld [vmem:[%s2914_s19 + $0x58] sm:$0xff] }
 0x1b1   : > { %v2044_v37 = vmax.f32 %v2028_v29, 0.0  ;;  %v1542_v62 = vsel %vm374_vm0, %v1526_v28, 0.0 }
 0x1b2   : > { %v2013_v23 = vadd.f32 %v1997_v59, %v1965_v55  ;;  %v1541_v55 = vsel %vm374_vm0, %v1525_v11, 0.0 }
 0x1b3   : > { %v2060_v38 = vmin.f32 %v2044_v37, 6.0 }
 0x1b4   : > { %v2029_v8 = vadd.f32 %v3679_v1, %v2013_v23  ;;  %v1532_v1 = vsel %vm374_vm0, %v1516_v2, 0.0 }
 0x1b5   : > { %2673 = vmatprep.mubr.msk.f32.mxu1 %vm277_vm1, %v2060_v38 }
 0x1b6   : > { %v2045_v43 = vmax.f32 %v2029_v8, 0.0  ;;  %v1528_v8 = vld [vmem:[%s2914_s19 + $0x68] sm:$0xff] }
 0x1b7   : > { %v1544_v2 = vsel %vm374_vm0, %v1528_v8, 0.0 }
 0x1b8   : > { %v2061_v45 = vmin.f32 %v2045_v43, 6.0  ;;  %v1527_v43 = vld [vmem:[%s2914_s19 + $0x60] sm:$0xff] }
 0x1ba   : > { %2674 = vmatmul.mubr.msk.f32.gmra.mrb[28].mxu1 %vm277_vm1, %v2061_v45 }
 0x1e8   : > { %v2618_v9 = vpop.f32.mrb[32].mxu0 }
 0x1e9   : > { %v1442_v34 = vadd.f32 %v2618_v9, %v3917_v54  ;;  %v1436_v31 = vpop.f32.mrb[33].mxu0 }
 0x1ea   : > { %v1437_v0 = vadd.f32 %v3917_v54, %v1436_v31 }
 0x1eb   : > { %v1548_v13 = vadd.f32 %v1532_v1, %v1442_v34  ;;  %v1543_v1 = vsel %vm374_vm0, %v1527_v43, 0.0 }
 0x1ec   : > { %v1547_v24 = vadd.f32 %v1531_v16, %v1437_v0  ;;  %v1530_v0 = vld [vmem:[%s2914_s19 + $0x78] sm:$0xff] }
 0x1ed   : > { %1564 = vst [vmem:[%s3926_s22 + $0x8] sm:$0xff] %v1548_v13  ;;  %v1529_v13 = vld [vmem:[%s2914_s19 + $0x70] sm:$0xff]  ;;  %v1546_v46 = vsel %vm374_vm0, %v1530_v0, 0.0 }
 0x1ee   : > { %1563 = vst [vmem:[%s3926_s22] sm:$0xff] %v1547_v24 }
 0x1f7   : > { %v2621_v12 = vpop.f32.mrb[0].mxu1 }
 0x1f8   : > { %v1452_v49 = vadd.f32 %v2621_v12, %v3917_v54  ;;  %v1446_v17 = vpop.f32.mrb[1].mxu1 }
 0x1f9   : > { %v1447_v20 = vadd.f32 %v3917_v54, %v1446_v17 }
 0x1fa   : > { %v1550_v42 = vadd.f32 %v1534_v26, %v1452_v49  ;;  %v1545_v26 = vsel %vm374_vm0, %v1529_v13, 0.0 }
 0x1fb   : > { %v1549_v57 = vadd.f32 %v1533_v10, %v1447_v20  ;;  %v2256_v20 = vld [vmem:[%s2914_s19 + $0x88] sm:$0xff] }
 0x1fc   : > { %1566 = vst [vmem:[%s3926_s22 + $0x18] sm:$0xff] %v1550_v42  ;;  %v2255_v42 = vld [vmem:[%s2914_s19 + $0x80] sm:$0xff]  ;;  %v2272_v3 = vsel %vm374_vm0, %v2256_v20, 0.0 }
 0x1fd   : > { %1565 = vst [vmem:[%s3926_s22 + $0x10] sm:$0xff] %v1549_v57 }
 0x207   : > { %v2624_v40 = vpop.f32.mrb[2].mxu1 }
 0x208   : > { %v1462_v47 = vadd.f32 %v2624_v40, %v3917_v54  ;;  %v1456_v50 = vpop.f32.mrb[3].mxu1 }
 0x209   : > { %v1457_v41 = vadd.f32 %v3917_v54, %v1456_v50 }
 0x20a   : > { %v1552_v5 = vadd.f32 %v1536_v25, %v1462_v47  ;;  %v2271_v25 = vsel %vm374_vm0, %v2255_v42, 0.0 }
 0x20b   : > { %v1551_v58 = vadd.f32 %v1535_v51, %v1457_v41  ;;  %v2258_v41 = vld [vmem:[%s2914_s19 + $0x98] sm:$0xff] }
 0x20c   : > { %1568 = vst [vmem:[%s3926_s22 + $0x28] sm:$0xff] %v1552_v5  ;;  %v2257_v5 = vld [vmem:[%s2914_s19 + $0x90] sm:$0xff]  ;;  %v2274_v4 = vsel %vm374_vm0, %v2258_v41, 0.0 }
 0x20d   : > { %1567 = vst [vmem:[%s3926_s22 + $0x20] sm:$0xff] %v1551_v58 }
 0x212   : > { %v2627_v15 = vpop.f32.mrb[4].mxu1 }
 0x213   : > { %v1472_v63 = vadd.f32 %v2627_v15, %v3917_v54  ;;  %v1466_v33 = vpop.f32.mrb[5].mxu1 }
 0x214   : > { %v1467_v44 = vadd.f32 %v3917_v54, %v1466_v33 }
 0x215   : > { %v1554_v52 = vadd.f32 %v1538_v18, %v1472_v63  ;;  %v2273_v18 = vsel %vm374_vm0, %v2257_v5, 0.0 }
 0x216   : > { %v1553_v39 = vadd.f32 %v1537_v21, %v1467_v44  ;;  %v2260_v44 = vld [vmem:[%s2914_s19 + $0xa8] sm:$0xff] }
 0x217   : > { %1570 = vst [vmem:[%s3926_s22 + $0x38] sm:$0xff] %v1554_v52  ;;  %v2259_v52 = vld [vmem:[%s2914_s19 + $0xa0] sm:$0xff]  ;;  %v2276_v19 = vsel %vm374_vm0, %v2260_v44, 0.0 }
 0x218   : > { %1569 = vst [vmem:[%s3926_s22 + $0x30] sm:$0xff] %v1553_v39 }
 0x21c   : > { %v2630_v48 = vpop.f32.mrb[6].mxu1 }
 0x21d   : > { %v1482_v22 = vadd.f32 %v2630_v48, %v3917_v54  ;;  %v1476_v7 = vpop.f32.mrb[7].mxu1 }
 0x21e   : > { %v1477_v14 = vadd.f32 %v3917_v54, %v1476_v7 }
 0x21f   : > { %v1556_v60 = vadd.f32 %v1540_v56, %v1482_v22  ;;  %v2275_v56 = vsel %vm374_vm0, %v2259_v52, 0.0 }
 0x220   : > { %v1555_v53 = vadd.f32 %v1539_v30, %v1477_v14  ;;  %v2262_v14 = vld [vmem:[%s2914_s19 + $0xb8] sm:$0xff] }
 0x221   : > { %1572 = vst [vmem:[%s3926_s22 + $0x48] sm:$0xff] %v1556_v60  ;;  %v2261_v60 = vld [vmem:[%s2914_s19 + $0xb0] sm:$0xff]  ;;  %v2278_v28 = vsel %vm374_vm0, %v2262_v14, 0.0 }
 0x222   : > { %1571 = vst [vmem:[%s3926_s22 + $0x40] sm:$0xff] %v1555_v53 }
 0x228   : > { %v2633_v35 = vpop.f32.mrb[8].mxu1 }
 0x229   : > { %v1492_v59 = vadd.f32 %v2633_v35, %v3917_v54  ;;  %v1486_v29 = vpop.f32.mrb[9].mxu1 }
 0x22a   : > { %v1487_v37 = vadd.f32 %v3917_v54, %v1486_v29 }
 0x22b   : > { %v1558_v23 = vadd.f32 %v1542_v62, %v1492_v59  ;;  %v2277_v62 = vsel %vm374_vm0, %v2261_v60, 0.0 }
 0x22c   : > { %v1557_v38 = vadd.f32 %v1541_v55, %v1487_v37  ;;  %v2264_v37 = vld [vmem:[%s2914_s19 + $0xc8] sm:$0xff] }
 0x22d   : > { %1574 = vst [vmem:[%s3926_s22 + $0x58] sm:$0xff] %v1558_v23  ;;  %v2263_v23 = vld [vmem:[%s2914_s19 + $0xc0] sm:$0xff]  ;;  %v2280_v8 = vsel %vm374_vm0, %v2264_v37, 0.0 }
 0x22e   : > { %1573 = vst [vmem:[%s3926_s22 + $0x50] sm:$0xff] %v1557_v38 }
 0x233   : > { %v2636_v45 = vpop.f32.mrb[10].mxu1 }
 0x234   : > { %v1502_v61 = vadd.f32 %v2636_v45, %v3917_v54  ;;  %v1496_v9 = vpop.f32.mrb[11].mxu1 }
 0x235   : > { %v1497_v34 = vadd.f32 %v3917_v54, %v1496_v9 }
 0x236   : > { %v1560_v31 = vadd.f32 %v1544_v2, %v1502_v61  ;;  %v2279_v2 = vsel %vm374_vm0, %v2263_v23, 0.0 }
 0x237   : > { %v1559_v16 = vadd.f32 %v1543_v1, %v1497_v34  ;;  %v2266_v34 = vld [vmem:[%s2914_s19 + $0xd8] sm:$0xff] }
 0x238   : > { %1576 = vst [vmem:[%s3926_s22 + $0x68] sm:$0xff] %v1560_v31  ;;  %v2265_v31 = vld [vmem:[%s2914_s19 + $0xd0] sm:$0xff]  ;;  %v2282_v0 = vsel %vm374_vm0, %v2266_v34, 0.0 }
 0x239   : > { %1575 = vst [vmem:[%s3926_s22 + $0x60] sm:$0xff] %v1559_v16 }
 0x23d   : > { %v2639_v24 = vpop.f32.mrb[12].mxu1 }
 0x23e   : > { %v1512_v36 = vadd.f32 %v2639_v24, %v3917_v54  ;;  %v1506_v12 = vpop.f32.mrb[13].mxu1 }
 0x23f   : > { %v1507_v49 = vadd.f32 %v3917_v54, %v1506_v12 }
 0x240   : > { %v1562_v17 = vadd.f32 %v1546_v46, %v1512_v36  ;;  %v2281_v46 = vsel %vm374_vm0, %v2265_v31, 0.0 }
 0x241   : > { %v1561_v10 = vadd.f32 %v1545_v26, %v1507_v49  ;;  %v2268_v49 = vld [vmem:[%s2914_s19 + $0xe8] sm:$0xff] }
 0x242   : > { %1578 = vst [vmem:[%s3926_s22 + $0x78] sm:$0xff] %v1562_v17  ;;  %v2267_v17 = vld [vmem:[%s2914_s19 + $0xe0] sm:$0xff]  ;;  %v2284_v20 = vsel %vm374_vm0, %v2268_v49, 0.0 }
 0x243   : > { %1577 = vst [vmem:[%s3926_s22 + $0x70] sm:$0xff] %v1561_v10 }
 0x247   : > { %v2654_v57 = vpop.f32.mrb[14].mxu1 }
 0x248   : > { %v2182_v6 = vadd.f32 %v2654_v57, %v3917_v54  ;;  %v2176_v40 = vpop.f32.mrb[15].mxu1 }
 0x249   : > { %v2177_v47 = vadd.f32 %v3917_v54, %v2176_v40 }
 0x24a   : > { %v2288_v50 = vadd.f32 %v2272_v3, %v2182_v6  ;;  %v2283_v3 = vsel %vm374_vm0, %v2267_v17, 0.0 }
 0x24b   : > { %v2287_v51 = vadd.f32 %v2271_v25, %v2177_v47  ;;  %v2270_v47 = vld [vmem:[%s2914_s19 + $0xf8] sm:$0xff] }
 0x24c   : > { %2304 = vst [vmem:[%s3926_s22 + $0x88] sm:$0xff] %v2288_v50  ;;  %v2269_v50 = vld [vmem:[%s2914_s19 + $0xf0] sm:$0xff]  ;;  %v2286_v41 = vsel %vm374_vm0, %v2270_v47, 0.0  ;;  %s2750_s19 = scalar_lea.vmem %s4055_s29, 4096 }
 0x24d   : > { %2303 = vst [vmem:[%s3926_s22 + $0x80] sm:$0xff] %v2287_v51  ;;  %p2751_p11 = scmp.ne.s32.totalorder %s4055_s29, %s2750_s19  ;;  %p2758_p1 = scmp.lt.s32.totalorder %s2756_s16, %s2750_s19 }
 0x24f   : > { %p2752_p12 = pnand %p2751_p11, %p2896_p5  ;;  %p2759_p2 = por %p2758_p1, %p2757_p0 }
 0x251   : > { %v2657_v58 = vpop.f32.mrb[16].mxu1  ;;  %p2753_p13 = pneg %p2752_p12 }
 0x252   : > { %v2192_v27 = vadd.f32 %v2657_v58, %v3917_v54  ;;  %v2186_v15 = vpop.f32.mrb[17].mxu1 }
 0x253   : > { %v2187_v63 = vadd.f32 %v3917_v54, %v2186_v15  ;;  %p2760_p3 = pnand %p2759_p2, %p2753_p13 }
 0x254   : > { %v2290_v33 = vadd.f32 %v2274_v4, %v2192_v27  ;;  %v2285_v4 = vsel %vm374_vm0, %v2269_v50, 0.0 }
 0x255   : > { %v2289_v21 = vadd.f32 %v2273_v18, %v2187_v63 }
 0x256   : > { %2306 = vst [vmem:[%s3926_s22 + $0x98] sm:$0xff] %v2290_v33 }
 0x257   : > { %2305 = vst [vmem:[%s3926_s22 + $0x90] sm:$0xff] %v2289_v21 }
 0x25b   : > { %v2660_v39 = vpop.f32.mrb[18].mxu1 }
 0x25c   : > { %v2202_v32 = vadd.f32 %v2660_v39, %v3917_v54  ;;  %v2196_v48 = vpop.f32.mrb[19].mxu1 }
 0x25d   : > { %v2197_v22 = vadd.f32 %v3917_v54, %v2196_v48 }
 0x25e   : > { %v2292_v7 = vadd.f32 %v2276_v19, %v2202_v32 }
 0x25f   : > { %v2291_v30 = vadd.f32 %v2275_v56, %v2197_v22 }
 0x260   : > { %2308 = vst [vmem:[%s3926_s22 + $0xa8] sm:$0xff] %v2292_v7 }
 0x261   : > { %2307 = vst [vmem:[%s3926_s22 + $0xa0] sm:$0xff] %v2291_v30 }
 0x265   : > { %v2663_v53 = vpop.f32.mrb[20].mxu1 }
 0x266   : > { %v2212_v11 = vadd.f32 %v2663_v53, %v3917_v54  ;;  %v2206_v35 = vpop.f32.mrb[21].mxu1 }
 0x267   : > { %v2207_v59 = vadd.f32 %v3917_v54, %v2206_v35 }
 0x268   : > { %v2294_v29 = vadd.f32 %v2278_v28, %v2212_v11 }
 0x269   : > { %v2293_v55 = vadd.f32 %v2277_v62, %v2207_v59 }
 0x26a   : > { %2310 = vst [vmem:[%s3926_s22 + $0xb8] sm:$0xff] %v2294_v29 }
 0x26b   : > { %2309 = vst [vmem:[%s3926_s22 + $0xb0] sm:$0xff] %v2293_v55 }
 0x26f   : > { %v2666_v38 = vpop.f32.mrb[22].mxu1 }
 0x270   : > { %v2222_v43 = vadd.f32 %v2666_v38, %v3917_v54  ;;  %v2216_v45 = vpop.f32.mrb[23].mxu1 }
 0x271   : > { %v2217_v61 = vadd.f32 %v3917_v54, %v2216_v45 }
 0x272   : > { %v2296_v9 = vadd.f32 %v2280_v8, %v2222_v43 }
 0x273   : > { %v2295_v1 = vadd.f32 %v2279_v2, %v2217_v61 }
 0x274   : > { %2312 = vst [vmem:[%s3926_s22 + $0xc8] sm:$0xff] %v2296_v9 }
 0x275   : > { %2311 = vst [vmem:[%s3926_s22 + $0xc0] sm:$0xff] %v2295_v1 }
 0x279   : > { %v2669_v16 = vpop.f32.mrb[24].mxu1 }
 0x27a   : > { %v2232_v13 = vadd.f32 %v2669_v16, %v3917_v54  ;;  %v2226_v24 = vpop.f32.mrb[25].mxu1 }
 0x27b   : > { %v2227_v36 = vadd.f32 %v3917_v54, %v2226_v24 }
 0x27c   : > { %v2298_v12 = vadd.f32 %v2282_v0, %v2232_v13 }
 0x27d   : > { %v2297_v26 = vadd.f32 %v2281_v46, %v2227_v36 }
 0x27e   : > { %2314 = vst [vmem:[%s3926_s22 + $0xd8] sm:$0xff] %v2298_v12 }
 0x27f   : > { %2313 = vst [vmem:[%s3926_s22 + $0xd0] sm:$0xff] %v2297_v26 }
 0x283   : > { %v2672_v10 = vpop.f32.mrb[26].mxu1 }
 0x284   : > { %v2242_v42 = vadd.f32 %v2672_v10, %v3917_v54  ;;  %v2236_v57 = vpop.f32.mrb[27].mxu1 }
 0x285   : > { %v2237_v6 = vadd.f32 %v3917_v54, %v2236_v57 }
 0x286   : > { %v2300_v40 = vadd.f32 %v2284_v20, %v2242_v42 }
 0x287   : > { %v2299_v25 = vadd.f32 %v2283_v3, %v2237_v6 }
 0x288   : > { %2316 = vst [vmem:[%s3926_s22 + $0xe8] sm:$0xff] %v2300_v40 }
 0x289   : > { %2315 = vst [vmem:[%s3926_s22 + $0xe0] sm:$0xff] %v2299_v25 }
 0x28d   : > { %v2675_v51 = vpop.f32.mrb[28].mxu1 }
 0x28e   : > { %v2252_v5 = vadd.f32 %v2675_v51, %v3917_v54  ;;  %v2246_v58 = vpop.f32.mrb[29].mxu1 }
 0x28f   : > { %v2247_v27 = vadd.f32 %v3917_v54, %v2246_v58 }
 0x290   : > { %v2302_v15 = vadd.f32 %v2286_v41, %v2252_v5 }
 0x291   : > { %v2301_v18 = vadd.f32 %v2285_v4, %v2247_v27 }
 0x292   : > { %2318 = vst [vmem:[%s3926_s22 + $0xf8] sm:$0xff] %v2302_v15 }
 0x293   : > { %2317 = vst [vmem:[%s3926_s22 + $0xf0] sm:$0xff] %v2301_v18 }
 0x294   : > { %2763 = shalt.err (!%p2760_p3)
}
 0x295   : > { %s2764_s17 = scalar_lea.hbm %s4053_s13, 4096  ;;  %s2768_s21 = scalar_lea.hbm %s4109_s7, 8192 }
 0x296   : > { %p2765_p4 = scmp.ne.s32.totalorder %s4053_s13, %s2764_s17  ;;  %p2769_p9 = scmp.lt.u32.totalorder %s4053_s13, %s4109_s7 }
 0x297   : > { %p2770_p10 = scmp.lt.u32.totalorder %s2768_s21, %s2764_s17  ;;  %p2772_p12 = scmp.lt.u32.totalorder %s2764_s17, %s4053_s13 }
 0x298   : > { %p2766_p7 = pnand %p2765_p4, %p2896_p5 }
 0x299   : > { %p2771_p11 = por %p2770_p10, %p2769_p9 }
 0x29a   : > { %p2767_p8 = pneg %p2766_p7 }
 0x29b   : > { %p2773_p13 = por %p2772_p12, %p2771_p11 }
 0x29d   : > { %p2774_p0 = pnand %p2773_p13, %p2767_p8 }
 0x29f   : > { %2777 = shalt.err (!%p2774_p0)
}
 0x2a0   : > { %s2816_s8 = smov 128   ;;  %s2817_s9 = smov 8  }
 0x2a1   : > { %2706 = dma.vmem_to_hbm [thread:$0]  (%p2896_p5), %s4055_s29, 4096, %s4053_s13, %s4061_s28, %s2816_s8, %s2816_s8, %s2817_s9  }
 0x2a2 PF: > { %p2712_p1 = scmp.ge.s32.totalorder %s2812_s27, 2  ;;  %s2348_s19 = sand.u32 1, %s2800_s24  }
 0x2a3   : > { %s2349_s14 = scalar_lea.sflag [#allocation4], %s2348_s19 }
 0x2a4   : > { %p2709_p2 = pnand %p2712_p1, %p2900_p6 }
 0x2a6   : > { %2795 = dma.done.wait (!%p2709_p2), %s2349_s14, 4096  }
 0x2a7   : > { %2797 = vsyncadd (!%p2709_p2), %s2349_s14, 4294963200  ;;  %p17_p3 = scmp.ge.s32.totalorder %s2883_s30, 4   ;;  %s4112_s24 = smov %s2804_s25 }
 0x2a8   : > { %s4113_s25 = smov %s2808_s26  ;;  %s4114_s26 = smov %s2894_s10 }
 0x2a9   : > { %s4115_s27 = smov %s2883_s30  ;;  %19 = sbr.rel (!%p17_p3) target bundleno = 3 (0x3), region = 89 }
 0x2b0   :  { %2354 = vsyncpa [#allocation4], 1 }
 0x2b1   :  { %2356 = vsyncpa [#allocation4 + $0x1], 1 }

</bundles_post_ra>
